<compile_context>
chip_gen: v6e
topology: v6e:2x2x1
jax: 0.10.0
libtpu: 0.0.40
codegen_flags: <defaults>
</compile_context>

<pallas_src>
import jax
import jax.numpy as jnp
from jax.experimental import pallas as pl
from jax.experimental.pallas import tpu as pltpu

LANE = 128
SUBLANE = 8


def _round_up(n, m):
    return ((n + m - 1) // m) * m


def _sigmoid(x):
    # Exact sigmoid via tanh: one EUP transcendental, no divide on the
    # serial critical path.
    return 0.5 * jnp.tanh(0.5 * x) + 0.5


def lstm_fused_kernel(x_ref, wih_ref, b_ref, whh_ref, wout_ref, bout_ref,
                      out_ref, hs_ref):
    """Fully fused LSTM forward.

    x_ref   : (S, Bp, I)    raw input, batch-padded
    wih_ref : (I, 4*Hp)     input weights, gate-padded columns
    b_ref   : (1, 4*Hp)     b_ih + b_hh, gate-padded
    whh_ref : (HR, 4*Hp)    recurrent weights, rows padded to HR (>= H)
    wout_ref: (Hp, Op)      Linear head weights, zero-padded
    bout_ref: (1, Op)       Linear head bias, zero-padded
    out_ref : (S*Bp, Op)    lane-dense prediction slab
    hs_ref  : (S*Bp, Hp)    VMEM scratch holding all hidden states
    """
    S, Bp, I = x_ref.shape
    HR, G = whh_ref.shape
    Hp = G // 4

    h = jnp.zeros((Bp, Hp), jnp.float32)   # carried in vregs (1 vreg each)
    c = jnp.zeros((Bp, Hp), jnp.float32)

    # S is small and static -> full unroll gives the scheduler cross-step
    # visibility.  (For long sequences switch to lax.fori_loop.)
    for t in range(S):
        x_t = x_ref[t]                                        # (Bp, I)

        # Input projection + bias, fused.  I is tiny (1), so this is a sum of
        # VPU broadcast-multiplies, not a matmul.
        gates = x_t[:, 0:1] * wih_ref[0:1, :] + b_ref[...]    # (Bp, G)
        for k in range(1, I):
            gates = gates + x_t[:, k:k + 1] * wih_ref[k:k + 1, :]

        # Recurrent projection: only the first HR (= H rounded to 8) lanes of
        # h carry signal, so contract over HR rows instead of Hp.
        gates = gates + jnp.dot(h[:, :HR], whh_ref[...],
                                preferred_element_type=jnp.float32)

        # Lane-aligned gate slices (offsets are multiples of 128).
        i_g = _sigmoid(gates[:, 0 * Hp:1 * Hp])
        f_g = _sigmoid(gates[:, 1 * Hp:2 * Hp])
        g_g = jnp.tanh(gates[:, 2 * Hp:3 * Hp])
        o_g = _sigmoid(gates[:, 3 * Hp:4 * Hp])

        c = f_g * c + i_g * g_g
        h = o_g * jnp.tanh(c)

        hs_ref[t * Bp:(t + 1) * Bp, :] = h                    # static slice

    # Fused Linear head: one dense matmul over all S*Bp rows, lane-dense out.
    hs = hs_ref[...]                                          # (S*Bp, Hp)
    pred = jnp.dot(hs, wout_ref[...], preferred_element_type=jnp.float32)
    out_ref[...] = pred + bout_ref[...]


def _pad_gate_cols(w, H, Hp):
    """(rows, 4H) -> (rows, 4Hp): each PyTorch gate block (i, f, g, o) gets its
    own lane-aligned Hp-wide slot; padded columns are zero."""
    rows = w.shape[0]
    out = jnp.zeros((rows, 4 * Hp), w.dtype)
    for g in range(4):
        out = out.at[:, g * Hp:g * Hp + H].set(w[:, g * H:(g + 1) * H])
    return out


@jax.jit
def lstm_forward(x, w_ih, w_hh, b_ih, b_hh, w_out, b_out):
    """x: (S, B, I) f32.  Weights in PyTorch convention:
    w_ih (4H, I), w_hh (4H, H), b_ih (4H,), b_hh (4H,), w_out (O, H), b_out (O,).
    Returns (S, B, O) f32.  h0 = c0 = 0 (matches init_hidden())."""
    S, B, I = x.shape
    H = w_hh.shape[1]
    O = w_out.shape[0]

    Hp = _round_up(H, LANE)          # gate block lane width (128)
    HR = _round_up(H, SUBLANE)       # recurrent contraction rows (32)
    Bp = _round_up(B, SUBLANE)       # batch padded to full sublanes (8)
    Op = _round_up(O, LANE)          # lane-dense output width (128)
    G = 4 * Hp

    # ---- weight prep: gate-padded, lane/sublane-aligned, zeros elsewhere ----
    wih_p = _pad_gate_cols(w_ih.T.astype(jnp.float32), H, Hp)            # (I, G)
    whh_p = jnp.zeros((HR, G), jnp.float32).at[:H, :].set(
        _pad_gate_cols(w_hh.T.astype(jnp.float32), H, Hp))               # (HR, G)
    b_p = _pad_gate_cols((b_ih + b_hh).reshape(1, 4 * H).astype(jnp.float32),
                         H, Hp)                                          # (1, G)
    wout_p = jnp.zeros((Hp, Op), jnp.float32).at[:H, :O].set(
        w_out.T.astype(jnp.float32))                                     # (Hp, Op)
    bout_p = jnp.zeros((1, Op), jnp.float32).at[:, :O].set(
        b_out.astype(jnp.float32).reshape(1, O))                         # (1, Op)

    # ---- batch pad the (tiny) input ----
    x_p = jnp.zeros((S, Bp, I), jnp.float32).at[:, :B, :].set(
        x.astype(jnp.float32))

    # ---- single fused Pallas invocation ----
    out = pl.pallas_call(
        lstm_fused_kernel,
        out_shape=jax.ShapeDtypeStruct((S * Bp, Op), jnp.float32),
        grid_spec=pltpu.PrefetchScalarGridSpec(
            num_scalar_prefetch=0,
            grid=(1,),
            in_specs=[
                pl.BlockSpec((S, Bp, I), lambda i: (0, 0, 0)),   # x
                pl.BlockSpec((I, G), lambda i: (0, 0)),          # W_ih
                pl.BlockSpec((1, G), lambda i: (0, 0)),          # bias
                pl.BlockSpec((HR, G), lambda i: (0, 0)),         # W_hh
                pl.BlockSpec((Hp, Op), lambda i: (0, 0)),        # W_out
                pl.BlockSpec((1, Op), lambda i: (0, 0)),         # b_out
            ],
            out_specs=pl.BlockSpec((S * Bp, Op), lambda i: (0, 0)),
            scratch_shapes=[pltpu.VMEM((S * Bp, Hp), jnp.float32)],
        ),
        compiler_params=pltpu.CompilerParams(
            dimension_semantics=("arbitrary",)),
    )(x_p, wih_p, b_p, whh_p, wout_p, bout_p)

    # Slice padded batch / output lanes back off.
    return out.reshape(S, Bp, Op)[:, :B, :O]


def lstm_reference(x, w_ih, w_hh, b_ih, b_hh, w_out, b_out):
    """Pure-JAX reference (lax.scan) matching torch.nn.LSTM + Linear."""
    H = w_hh.shape[1]
    b = b_ih + b_hh

    def step(carry, x_t):
        h, c = carry
        gates = x_t @ w_ih.T + h @ w_hh.T + b
        i = jax.nn.sigmoid(gates[:, 0 * H:1 * H])
        f = jax.nn.sigmoid(gates[:, 1 * H:2 * H])
        g = jnp.tanh(gates[:, 2 * H:3 * H])
        o = jax.nn.sigmoid(gates[:, 3 * H:4 * H])
        c = f * c + i * g
        h = o * jnp.tanh(c)
        return (h, c), h

    B = x.shape[1]
    h0 = jnp.zeros((B, H), jnp.float32)
    c0 = jnp.zeros((B, H), jnp.float32)
    _, hs = jax.lax.scan(step, (h0, c0), x)
    return hs @ w_out.T + b_out


if __name__ == "__main__":
    # Module config: input_size=1, hidden_size=25, output_size=1, num_layers=1.
    # init_hidden(minibatch_size=5) => batch must be 5.
    input_size, hidden_size, output_size = 1, 25, 1
    seq_len, batch = 8, 5

    key = jax.random.PRNGKey(0)
    ks = jax.random.split(key, 7)
    bound = float(1.0 / (hidden_size ** 0.5))   # PyTorch default init bound

    def u(k, shape):
        return jax.random.uniform(k, shape, jnp.float32, -bound, bound)

    w_ih = u(ks[0], (4 * hidden_size, input_size))
    w_hh = u(ks[1], (4 * hidden_size, hidden_size))
    b_ih = u(ks[2], (4 * hidden_size,))
    b_hh = u(ks[3], (4 * hidden_size,))
    w_out = u(ks[4], (output_size, hidden_size))
    b_out = u(ks[5], (output_size,))

    x = jax.random.normal(ks[6], (seq_len, batch, input_size), jnp.float32)

    pred = lstm_forward(x, w_ih, w_hh, b_ih, b_hh, w_out, b_out)
    pred = jax.block_until_ready(pred)

    ref = lstm_reference(x, w_ih, w_hh, b_ih, b_hh, w_out, b_out)
    assert pred.shape == (seq_len, batch, output_size)
    # Tolerance leaves headroom for the tanh-based sigmoid / in-kernel EUP
    # transcendentals; any structural bug would be orders of magnitude larger.
    assert jnp.allclose(pred, ref, atol=1e-4, rtol=1e-4), "mismatch vs reference"

    print("KERNEL_OK")
</pallas_src>

<mosaic_0001>
module attributes {stable_mosaic.version = 11 : i64} {
  func.func @lstm_fused_kernel(%arg0: i32, %arg1: memref<8x8x1xf32, #tpu.memory_space<vmem>>, %arg2: memref<1x512xf32, #tpu.memory_space<vmem>>, %arg3: memref<1x512xf32, #tpu.memory_space<vmem>>, %arg4: memref<32x512xf32, #tpu.memory_space<vmem>>, %arg5: memref<128x128xf32, #tpu.memory_space<vmem>>, %arg6: memref<1x128xf32, #tpu.memory_space<vmem>>, %arg7: memref<64x128xf32, #tpu.memory_space<vmem>>, %arg8: memref<64x128xf32, #tpu.memory_space<vmem>>) attributes {dimension_semantics = [#tpu.dimension_semantics<arbitrary>], iteration_bounds = array<i64: 1>, scalar_prefetch = 0 : i64, scratch_operands = 1 : i64, tpu.core_type = #tpu.core_type<tc>, window_params = [{pipeline_mode = #tpu.pipeline_mode<synchronous>, transform_indices = @transform_0, window_bounds = array<i64: 8, 8, 1>}, {pipeline_mode = #tpu.pipeline_mode<synchronous>, transform_indices = @transform_1, window_bounds = array<i64: 1, 512>}, {pipeline_mode = #tpu.pipeline_mode<synchronous>, transform_indices = @transform_2, window_bounds = array<i64: 1, 512>}, {pipeline_mode = #tpu.pipeline_mode<synchronous>, transform_indices = @transform_3, window_bounds = array<i64: 32, 512>}, {pipeline_mode = #tpu.pipeline_mode<synchronous>, transform_indices = @transform_4, window_bounds = array<i64: 128, 128>}, {pipeline_mode = #tpu.pipeline_mode<synchronous>, transform_indices = @transform_5, window_bounds = array<i64: 1, 128>}, {pipeline_mode = #tpu.pipeline_mode<synchronous>, transform_indices = @transform_6, window_bounds = array<i64: 64, 128>}]} {
    %cst = arith.constant 0.000000e+00 : f32
    %0 = vector.broadcast %cst : f32 to vector<8x128xf32>
    %cst_0 = arith.constant 0.000000e+00 : f32
    %1 = vector.broadcast %cst_0 : f32 to vector<8x128xf32>
    %c0 = arith.constant 0 : index
    %c0_1 = arith.constant 0 : index
    %c0_2 = arith.constant 0 : index
    %2 = vector.load %arg1[%c0, %c0_1, %c0_2] : memref<8x8x1xf32, #tpu.memory_space<vmem>>, vector<1x8x1xf32>
    %3 = vector.shape_cast %2 : vector<1x8x1xf32> to vector<8x1xf32>
    %c0_3 = arith.constant 0 : index
    %c0_4 = arith.constant 0 : index
    %4 = vector.load %arg2[%c0_3, %c0_4] : memref<1x512xf32, #tpu.memory_space<vmem>>, vector<1x512xf32>
    %5 = vector.broadcast %3 : vector<8x1xf32> to vector<8x512xf32>
    %6 = vector.broadcast %4 : vector<1x512xf32> to vector<8x512xf32>
    %7 = arith.mulf %5, %6 : vector<8x512xf32>
    %c0_5 = arith.constant 0 : index
    %c0_6 = arith.constant 0 : index
    %8 = vector.load %arg3[%c0_5, %c0_6] : memref<1x512xf32, #tpu.memory_space<vmem>>, vector<1x512xf32>
    %9 = vector.broadcast %8 : vector<1x512xf32> to vector<8x512xf32>
    %10 = arith.addf %7, %9 : vector<8x512xf32>
    %11 = vector.extract_strided_slice %0 {offsets = [0, 0], sizes = [8, 32], strides = [1, 1]} : vector<8x128xf32> to vector<8x32xf32>
    %c0_7 = arith.constant 0 : index
    %c0_8 = arith.constant 0 : index
    %12 = vector.load %arg4[%c0_7, %c0_8] : memref<32x512xf32, #tpu.memory_space<vmem>>, vector<32x512xf32>
    %cst_9 = arith.constant dense<0.000000e+00> : vector<8x512xf32>
    %13 = tpu.matmul %11, %12, %cst_9 {dimension_numbers = #tpu.dot_dimension_numbers<[1], [0], [0], [1], [0, 0, 1, 1], [], []>} : vector<8x32xf32>, vector<32x512xf32>, vector<8x512xf32> -> vector<8x512xf32>
    %14 = arith.addf %10, %13 : vector<8x512xf32>
    %15 = vector.extract_strided_slice %14 {offsets = [0, 0], sizes = [8, 128], strides = [1, 1]} : vector<8x512xf32> to vector<8x128xf32>
    %cst_10 = arith.constant 5.000000e-01 : f32
    %16 = vector.broadcast %cst_10 : f32 to vector<8x128xf32>
    %17 = arith.mulf %16, %15 : vector<8x128xf32>
    %18 = math.tanh %17 : vector<8x128xf32>
    %cst_11 = arith.constant 5.000000e-01 : f32
    %19 = vector.broadcast %cst_11 : f32 to vector<8x128xf32>
    %20 = arith.mulf %19, %18 : vector<8x128xf32>
    %cst_12 = arith.constant 5.000000e-01 : f32
    %21 = vector.broadcast %cst_12 : f32 to vector<8x128xf32>
    %22 = arith.addf %20, %21 : vector<8x128xf32>
    %23 = vector.extract_strided_slice %14 {offsets = [0, 128], sizes = [8, 128], strides = [1, 1]} : vector<8x512xf32> to vector<8x128xf32>
    %cst_13 = arith.constant 5.000000e-01 : f32
    %24 = vector.broadcast %cst_13 : f32 to vector<8x128xf32>
    %25 = arith.mulf %24, %23 : vector<8x128xf32>
    %26 = math.tanh %25 : vector<8x128xf32>
    %cst_14 = arith.constant 5.000000e-01 : f32
    %27 = vector.broadcast %cst_14 : f32 to vector<8x128xf32>
    %28 = arith.mulf %27, %26 : vector<8x128xf32>
    %cst_15 = arith.constant 5.000000e-01 : f32
    %29 = vector.broadcast %cst_15 : f32 to vector<8x128xf32>
    %30 = arith.addf %28, %29 : vector<8x128xf32>
    %31 = vector.extract_strided_slice %14 {offsets = [0, 256], sizes = [8, 128], strides = [1, 1]} : vector<8x512xf32> to vector<8x128xf32>
    %32 = math.tanh %31 : vector<8x128xf32>
    %33 = vector.extract_strided_slice %14 {offsets = [0, 384], sizes = [8, 128], strides = [1, 1]} : vector<8x512xf32> to vector<8x128xf32>
    %cst_16 = arith.constant 5.000000e-01 : f32
    %34 = vector.broadcast %cst_16 : f32 to vector<8x128xf32>
    %35 = arith.mulf %34, %33 : vector<8x128xf32>
    %36 = math.tanh %35 : vector<8x128xf32>
    %cst_17 = arith.constant 5.000000e-01 : f32
    %37 = vector.broadcast %cst_17 : f32 to vector<8x128xf32>
    %38 = arith.mulf %37, %36 : vector<8x128xf32>
    %cst_18 = arith.constant 5.000000e-01 : f32
    %39 = vector.broadcast %cst_18 : f32 to vector<8x128xf32>
    %40 = arith.addf %38, %39 : vector<8x128xf32>
    %41 = arith.mulf %30, %1 : vector<8x128xf32>
    %42 = arith.mulf %22, %32 : vector<8x128xf32>
    %43 = arith.addf %41, %42 : vector<8x128xf32>
    %44 = math.tanh %43 : vector<8x128xf32>
    %45 = arith.mulf %40, %44 : vector<8x128xf32>
    %c0_19 = arith.constant 0 : index
    %c0_20 = arith.constant 0 : index
    %46 = vector.load %arg8[%c0_19, %c0_20] : memref<64x128xf32, #tpu.memory_space<vmem>>, vector<8x128xf32>
    tpu.vector_store %arg8[%c0_19, %c0_20], %45 {strides = array<i32>} : memref<64x128xf32, #tpu.memory_space<vmem>>, vector<8x128xf32>,
    %c1 = arith.constant 1 : index
    %c0_21 = arith.constant 0 : index
    %c0_22 = arith.constant 0 : index
    %47 = vector.load %arg1[%c1, %c0_21, %c0_22] : memref<8x8x1xf32, #tpu.memory_space<vmem>>, vector<1x8x1xf32>
    %48 = vector.shape_cast %47 : vector<1x8x1xf32> to vector<8x1xf32>
    %c0_23 = arith.constant 0 : index
    %c0_24 = arith.constant 0 : index
    %49 = vector.load %arg2[%c0_23, %c0_24] : memref<1x512xf32, #tpu.memory_space<vmem>>, vector<1x512xf32>
    %50 = vector.broadcast %48 : vector<8x1xf32> to vector<8x512xf32>
    %51 = vector.broadcast %49 : vector<1x512xf32> to vector<8x512xf32>
    %52 = arith.mulf %50, %51 : vector<8x512xf32>
    %c0_25 = arith.constant 0 : index
    %c0_26 = arith.constant 0 : index
    %53 = vector.load %arg3[%c0_25, %c0_26] : memref<1x512xf32, #tpu.memory_space<vmem>>, vector<1x512xf32>
    %54 = vector.broadcast %53 : vector<1x512xf32> to vector<8x512xf32>
    %55 = arith.addf %52, %54 : vector<8x512xf32>
    %56 = vector.extract_strided_slice %45 {offsets = [0, 0], sizes = [8, 32], strides = [1, 1]} : vector<8x128xf32> to vector<8x32xf32>
    %c0_27 = arith.constant 0 : index
    %c0_28 = arith.constant 0 : index
    %57 = vector.load %arg4[%c0_27, %c0_28] : memref<32x512xf32, #tpu.memory_space<vmem>>, vector<32x512xf32>
    %cst_29 = arith.constant dense<0.000000e+00> : vector<8x512xf32>
    %58 = tpu.matmul %56, %57, %cst_29 {dimension_numbers = #tpu.dot_dimension_numbers<[1], [0], [0], [1], [0, 0, 1, 1], [], []>} : vector<8x32xf32>, vector<32x512xf32>, vector<8x512xf32> -> vector<8x512xf32>
    %59 = arith.addf %55, %58 : vector<8x512xf32>
    %60 = vector.extract_strided_slice %59 {offsets = [0, 0], sizes = [8, 128], strides = [1, 1]} : vector<8x512xf32> to vector<8x128xf32>
    %cst_30 = arith.constant 5.000000e-01 : f32
    %61 = vector.broadcast %cst_30 : f32 to vector<8x128xf32>
    %62 = arith.mulf %61, %60 : vector<8x128xf32>
    %63 = math.tanh %62 : vector<8x128xf32>
    %cst_31 = arith.constant 5.000000e-01 : f32
    %64 = vector.broadcast %cst_31 : f32 to vector<8x128xf32>
    %65 = arith.mulf %64, %63 : vector<8x128xf32>
    %cst_32 = arith.constant 5.000000e-01 : f32
    %66 = vector.broadcast %cst_32 : f32 to vector<8x128xf32>
    %67 = arith.addf %65, %66 : vector<8x128xf32>
    %68 = vector.extract_strided_slice %59 {offsets = [0, 128], sizes = [8, 128], strides = [1, 1]} : vector<8x512xf32> to vector<8x128xf32>
    %cst_33 = arith.constant 5.000000e-01 : f32
    %69 = vector.broadcast %cst_33 : f32 to vector<8x128xf32>
    %70 = arith.mulf %69, %68 : vector<8x128xf32>
    %71 = math.tanh %70 : vector<8x128xf32>
    %cst_34 = arith.constant 5.000000e-01 : f32
    %72 = vector.broadcast %cst_34 : f32 to vector<8x128xf32>
    %73 = arith.mulf %72, %71 : vector<8x128xf32>
    %cst_35 = arith.constant 5.000000e-01 : f32
    %74 = vector.broadcast %cst_35 : f32 to vector<8x128xf32>
    %75 = arith.addf %73, %74 : vector<8x128xf32>
    %76 = vector.extract_strided_slice %59 {offsets = [0, 256], sizes = [8, 128], strides = [1, 1]} : vector<8x512xf32> to vector<8x128xf32>
    %77 = math.tanh %76 : vector<8x128xf32>
    %78 = vector.extract_strided_slice %59 {offsets = [0, 384], sizes = [8, 128], strides = [1, 1]} : vector<8x512xf32> to vector<8x128xf32>
    %cst_36 = arith.constant 5.000000e-01 : f32
    %79 = vector.broadcast %cst_36 : f32 to vector<8x128xf32>
    %80 = arith.mulf %79, %78 : vector<8x128xf32>
    %81 = math.tanh %80 : vector<8x128xf32>
    %cst_37 = arith.constant 5.000000e-01 : f32
    %82 = vector.broadcast %cst_37 : f32 to vector<8x128xf32>
    %83 = arith.mulf %82, %81 : vector<8x128xf32>
    %cst_38 = arith.constant 5.000000e-01 : f32
    %84 = vector.broadcast %cst_38 : f32 to vector<8x128xf32>
    %85 = arith.addf %83, %84 : vector<8x128xf32>
    %86 = arith.mulf %75, %43 : vector<8x128xf32>
    %87 = arith.mulf %67, %77 : vector<8x128xf32>
    %88 = arith.addf %86, %87 : vector<8x128xf32>
    %89 = math.tanh %88 : vector<8x128xf32>
    %90 = arith.mulf %85, %89 : vector<8x128xf32>
    %c8 = arith.constant 8 : index
    %c0_39 = arith.constant 0 : index
    %91 = vector.load %arg8[%c8, %c0_39] : memref<64x128xf32, #tpu.memory_space<vmem>>, vector<8x128xf32>
    tpu.vector_store %arg8[%c8, %c0_39], %90 {strides = array<i32>} : memref<64x128xf32, #tpu.memory_space<vmem>>, vector<8x128xf32>,
    %c2 = arith.constant 2 : index
    %c0_40 = arith.constant 0 : index
    %c0_41 = arith.constant 0 : index
    %92 = vector.load %arg1[%c2, %c0_40, %c0_41] : memref<8x8x1xf32, #tpu.memory_space<vmem>>, vector<1x8x1xf32>
    %93 = vector.shape_cast %92 : vector<1x8x1xf32> to vector<8x1xf32>
    %c0_42 = arith.constant 0 : index
    %c0_43 = arith.constant 0 : index
    %94 = vector.load %arg2[%c0_42, %c0_43] : memref<1x512xf32, #tpu.memory_space<vmem>>, vector<1x512xf32>
    %95 = vector.broadcast %93 : vector<8x1xf32> to vector<8x512xf32>
    %96 = vector.broadcast %94 : vector<1x512xf32> to vector<8x512xf32>
    %97 = arith.mulf %95, %96 : vector<8x512xf32>
    %c0_44 = arith.constant 0 : index
    %c0_45 = arith.constant 0 : index
    %98 = vector.load %arg3[%c0_44, %c0_45] : memref<1x512xf32, #tpu.memory_space<vmem>>, vector<1x512xf32>
    %99 = vector.broadcast %98 : vector<1x512xf32> to vector<8x512xf32>
    %100 = arith.addf %97, %99 : vector<8x512xf32>
    %101 = vector.extract_strided_slice %90 {offsets = [0, 0], sizes = [8, 32], strides = [1, 1]} : vector<8x128xf32> to vector<8x32xf32>
    %c0_46 = arith.constant 0 : index
    %c0_47 = arith.constant 0 : index
    %102 = vector.load %arg4[%c0_46, %c0_47] : memref<32x512xf32, #tpu.memory_space<vmem>>, vector<32x512xf32>
    %cst_48 = arith.constant dense<0.000000e+00> : vector<8x512xf32>
    %103 = tpu.matmul %101, %102, %cst_48 {dimension_numbers = #tpu.dot_dimension_numbers<[1], [0], [0], [1], [0, 0, 1, 1], [], []>} : vector<8x32xf32>, vector<32x512xf32>, vector<8x512xf32> -> vector<8x512xf32>
    %104 = arith.addf %100, %103 : vector<8x512xf32>
    %105 = vector.extract_strided_slice %104 {offsets = [0, 0], sizes = [8, 128], strides = [1, 1]} : vector<8x512xf32> to vector<8x128xf32>
    %cst_49 = arith.constant 5.000000e-01 : f32
    %106 = vector.broadcast %cst_49 : f32 to vector<8x128xf32>
    %107 = arith.mulf %106, %105 : vector<8x128xf32>
    %108 = math.tanh %107 : vector<8x128xf32>
    %cst_50 = arith.constant 5.000000e-01 : f32
    %109 = vector.broadcast %cst_50 : f32 to vector<8x128xf32>
    %110 = arith.mulf %109, %108 : vector<8x128xf32>
    %cst_51 = arith.constant 5.000000e-01 : f32
    %111 = vector.broadcast %cst_51 : f32 to vector<8x128xf32>
    %112 = arith.addf %110, %111 : vector<8x128xf32>
    %113 = vector.extract_strided_slice %104 {offsets = [0, 128], sizes = [8, 128], strides = [1, 1]} : vector<8x512xf32> to vector<8x128xf32>
    %cst_52 = arith.constant 5.000000e-01 : f32
    %114 = vector.broadcast %cst_52 : f32 to vector<8x128xf32>
    %115 = arith.mulf %114, %113 : vector<8x128xf32>
    %116 = math.tanh %115 : vector<8x128xf32>
    %cst_53 = arith.constant 5.000000e-01 : f32
    %117 = vector.broadcast %cst_53 : f32 to vector<8x128xf32>
    %118 = arith.mulf %117, %116 : vector<8x128xf32>
    %cst_54 = arith.constant 5.000000e-01 : f32
    %119 = vector.broadcast %cst_54 : f32 to vector<8x128xf32>
    %120 = arith.addf %118, %119 : vector<8x128xf32>
    %121 = vector.extract_strided_slice %104 {offsets = [0, 256], sizes = [8, 128], strides = [1, 1]} : vector<8x512xf32> to vector<8x128xf32>
    %122 = math.tanh %121 : vector<8x128xf32>
    %123 = vector.extract_strided_slice %104 {offsets = [0, 384], sizes = [8, 128], strides = [1, 1]} : vector<8x512xf32> to vector<8x128xf32>
    %cst_55 = arith.constant 5.000000e-01 : f32
    %124 = vector.broadcast %cst_55 : f32 to vector<8x128xf32>
    %125 = arith.mulf %124, %123 : vector<8x128xf32>
    %126 = math.tanh %125 : vector<8x128xf32>
    %cst_56 = arith.constant 5.000000e-01 : f32
    %127 = vector.broadcast %cst_56 : f32 to vector<8x128xf32>
    %128 = arith.mulf %127, %126 : vector<8x128xf32>
    %cst_57 = arith.constant 5.000000e-01 : f32
    %129 = vector.broadcast %cst_57 : f32 to vector<8x128xf32>
    %130 = arith.addf %128, %129 : vector<8x128xf32>
    %131 = arith.mulf %120, %88 : vector<8x128xf32>
    %132 = arith.mulf %112, %122 : vector<8x128xf32>
    %133 = arith.addf %131, %132 : vector<8x128xf32>
    %134 = math.tanh %133 : vector<8x128xf32>
    %135 = arith.mulf %130, %134 : vector<8x128xf32>
    %c16 = arith.constant 16 : index
    %c0_58 = arith.constant 0 : index
    %136 = vector.load %arg8[%c16, %c0_58] : memref<64x128xf32, #tpu.memory_space<vmem>>, vector<8x128xf32>
    tpu.vector_store %arg8[%c16, %c0_58], %135 {strides = array<i32>} : memref<64x128xf32, #tpu.memory_space<vmem>>, vector<8x128xf32>,
    %c3 = arith.constant 3 : index
    %c0_59 = arith.constant 0 : index
    %c0_60 = arith.constant 0 : index
    %137 = vector.load %arg1[%c3, %c0_59, %c0_60] : memref<8x8x1xf32, #tpu.memory_space<vmem>>, vector<1x8x1xf32>
    %138 = vector.shape_cast %137 : vector<1x8x1xf32> to vector<8x1xf32>
    %c0_61 = arith.constant 0 : index
    %c0_62 = arith.constant 0 : index
    %139 = vector.load %arg2[%c0_61, %c0_62] : memref<1x512xf32, #tpu.memory_space<vmem>>, vector<1x512xf32>
    %140 = vector.broadcast %138 : vector<8x1xf32> to vector<8x512xf32>
    %141 = vector.broadcast %139 : vector<1x512xf32> to vector<8x512xf32>
    %142 = arith.mulf %140, %141 : vector<8x512xf32>
    %c0_63 = arith.constant 0 : index
    %c0_64 = arith.constant 0 : index
    %143 = vector.load %arg3[%c0_63, %c0_64] : memref<1x512xf32, #tpu.memory_space<vmem>>, vector<1x512xf32>
    %144 = vector.broadcast %143 : vector<1x512xf32> to vector<8x512xf32>
    %145 = arith.addf %142, %144 : vector<8x512xf32>
    %146 = vector.extract_strided_slice %135 {offsets = [0, 0], sizes = [8, 32], strides = [1, 1]} : vector<8x128xf32> to vector<8x32xf32>
    %c0_65 = arith.constant 0 : index
    %c0_66 = arith.constant 0 : index
    %147 = vector.load %arg4[%c0_65, %c0_66] : memref<32x512xf32, #tpu.memory_space<vmem>>, vector<32x512xf32>
    %cst_67 = arith.constant dense<0.000000e+00> : vector<8x512xf32>
    %148 = tpu.matmul %146, %147, %cst_67 {dimension_numbers = #tpu.dot_dimension_numbers<[1], [0], [0], [1], [0, 0, 1, 1], [], []>} : vector<8x32xf32>, vector<32x512xf32>, vector<8x512xf32> -> vector<8x512xf32>
    %149 = arith.addf %145, %148 : vector<8x512xf32>
    %150 = vector.extract_strided_slice %149 {offsets = [0, 0], sizes = [8, 128], strides = [1, 1]} : vector<8x512xf32> to vector<8x128xf32>
    %cst_68 = arith.constant 5.000000e-01 : f32
    %151 = vector.broadcast %cst_68 : f32 to vector<8x128xf32>
    %152 = arith.mulf %151, %150 : vector<8x128xf32>
    %153 = math.tanh %152 : vector<8x128xf32>
    %cst_69 = arith.constant 5.000000e-01 : f32
    %154 = vector.broadcast %cst_69 : f32 to vector<8x128xf32>
    %155 = arith.mulf %154, %153 : vector<8x128xf32>
    %cst_70 = arith.constant 5.000000e-01 : f32
    %156 = vector.broadcast %cst_70 : f32 to vector<8x128xf32>
    %157 = arith.addf %155, %156 : vector<8x128xf32>
    %158 = vector.extract_strided_slice %149 {offsets = [0, 128], sizes = [8, 128], strides = [1, 1]} : vector<8x512xf32> to vector<8x128xf32>
    %cst_71 = arith.constant 5.000000e-01 : f32
    %159 = vector.broadcast %cst_71 : f32 to vector<8x128xf32>
    %160 = arith.mulf %159, %158 : vector<8x128xf32>
    %161 = math.tanh %160 : vector<8x128xf32>
    %cst_72 = arith.constant 5.000000e-01 : f32
    %162 = vector.broadcast %cst_72 : f32 to vector<8x128xf32>
    %163 = arith.mulf %162, %161 : vector<8x128xf32>
    %cst_73 = arith.constant 5.000000e-01 : f32
    %164 = vector.broadcast %cst_73 : f32 to vector<8x128xf32>
    %165 = arith.addf %163, %164 : vector<8x128xf32>
    %166 = vector.extract_strided_slice %149 {offsets = [0, 256], sizes = [8, 128], strides = [1, 1]} : vector<8x512xf32> to vector<8x128xf32>
    %167 = math.tanh %166 : vector<8x128xf32>
    %168 = vector.extract_strided_slice %149 {offsets = [0, 384], sizes = [8, 128], strides = [1, 1]} : vector<8x512xf32> to vector<8x128xf32>
    %cst_74 = arith.constant 5.000000e-01 : f32
    %169 = vector.broadcast %cst_74 : f32 to vector<8x128xf32>
    %170 = arith.mulf %169, %168 : vector<8x128xf32>
    %171 = math.tanh %170 : vector<8x128xf32>
    %cst_75 = arith.constant 5.000000e-01 : f32
    %172 = vector.broadcast %cst_75 : f32 to vector<8x128xf32>
    %173 = arith.mulf %172, %171 : vector<8x128xf32>
    %cst_76 = arith.constant 5.000000e-01 : f32
    %174 = vector.broadcast %cst_76 : f32 to vector<8x128xf32>
    %175 = arith.addf %173, %174 : vector<8x128xf32>
    %176 = arith.mulf %165, %133 : vector<8x128xf32>
    %177 = arith.mulf %157, %167 : vector<8x128xf32>
    %178 = arith.addf %176, %177 : vector<8x128xf32>
    %179 = math.tanh %178 : vector<8x128xf32>
    %180 = arith.mulf %175, %179 : vector<8x128xf32>
    %c24 = arith.constant 24 : index
    %c0_77 = arith.constant 0 : index
    %181 = vector.load %arg8[%c24, %c0_77] : memref<64x128xf32, #tpu.memory_space<vmem>>, vector<8x128xf32>
    tpu.vector_store %arg8[%c24, %c0_77], %180 {strides = array<i32>} : memref<64x128xf32, #tpu.memory_space<vmem>>, vector<8x128xf32>,
    %c4 = arith.constant 4 : index
    %c0_78 = arith.constant 0 : index
    %c0_79 = arith.constant 0 : index
    %182 = vector.load %arg1[%c4, %c0_78, %c0_79] : memref<8x8x1xf32, #tpu.memory_space<vmem>>, vector<1x8x1xf32>
    %183 = vector.shape_cast %182 : vector<1x8x1xf32> to vector<8x1xf32>
    %c0_80 = arith.constant 0 : index
    %c0_81 = arith.constant 0 : index
    %184 = vector.load %arg2[%c0_80, %c0_81] : memref<1x512xf32, #tpu.memory_space<vmem>>, vector<1x512xf32>
    %185 = vector.broadcast %183 : vector<8x1xf32> to vector<8x512xf32>
    %186 = vector.broadcast %184 : vector<1x512xf32> to vector<8x512xf32>
    %187 = arith.mulf %185, %186 : vector<8x512xf32>
    %c0_82 = arith.constant 0 : index
    %c0_83 = arith.constant 0 : index
    %188 = vector.load %arg3[%c0_82, %c0_83] : memref<1x512xf32, #tpu.memory_space<vmem>>, vector<1x512xf32>
    %189 = vector.broadcast %188 : vector<1x512xf32> to vector<8x512xf32>
    %190 = arith.addf %187, %189 : vector<8x512xf32>
    %191 = vector.extract_strided_slice %180 {offsets = [0, 0], sizes = [8, 32], strides = [1, 1]} : vector<8x128xf32> to vector<8x32xf32>
    %c0_84 = arith.constant 0 : index
    %c0_85 = arith.constant 0 : index
    %192 = vector.load %arg4[%c0_84, %c0_85] : memref<32x512xf32, #tpu.memory_space<vmem>>, vector<32x512xf32>
    %cst_86 = arith.constant dense<0.000000e+00> : vector<8x512xf32>
    %193 = tpu.matmul %191, %192, %cst_86 {dimension_numbers = #tpu.dot_dimension_numbers<[1], [0], [0], [1], [0, 0, 1, 1], [], []>} : vector<8x32xf32>, vector<32x512xf32>, vector<8x512xf32> -> vector<8x512xf32>
    %194 = arith.addf %190, %193 : vector<8x512xf32>
    %195 = vector.extract_strided_slice %194 {offsets = [0, 0], sizes = [8, 128], strides = [1, 1]} : vector<8x512xf32> to vector<8x128xf32>
    %cst_87 = arith.constant 5.000000e-01 : f32
    %196 = vector.broadcast %cst_87 : f32 to vector<8x128xf32>
    %197 = arith.mulf %196, %195 : vector<8x128xf32>
    %198 = math.tanh %197 : vector<8x128xf32>
    %cst_88 = arith.constant 5.000000e-01 : f32
    %199 = vector.broadcast %cst_88 : f32 to vector<8x128xf32>
    %200 = arith.mulf %199, %198 : vector<8x128xf32>
    %cst_89 = arith.constant 5.000000e-01 : f32
    %201 = vector.broadcast %cst_89 : f32 to vector<8x128xf32>
    %202 = arith.addf %200, %201 : vector<8x128xf32>
    %203 = vector.extract_strided_slice %194 {offsets = [0, 128], sizes = [8, 128], strides = [1, 1]} : vector<8x512xf32> to vector<8x128xf32>
    %cst_90 = arith.constant 5.000000e-01 : f32
    %204 = vector.broadcast %cst_90 : f32 to vector<8x128xf32>
    %205 = arith.mulf %204, %203 : vector<8x128xf32>
    %206 = math.tanh %205 : vector<8x128xf32>
    %cst_91 = arith.constant 5.000000e-01 : f32
    %207 = vector.broadcast %cst_91 : f32 to vector<8x128xf32>
    %208 = arith.mulf %207, %206 : vector<8x128xf32>
    %cst_92 = arith.constant 5.000000e-01 : f32
    %209 = vector.broadcast %cst_92 : f32 to vector<8x128xf32>
    %210 = arith.addf %208, %209 : vector<8x128xf32>
    %211 = vector.extract_strided_slice %194 {offsets = [0, 256], sizes = [8, 128], strides = [1, 1]} : vector<8x512xf32> to vector<8x128xf32>
    %212 = math.tanh %211 : vector<8x128xf32>
    %213 = vector.extract_strided_slice %194 {offsets = [0, 384], sizes = [8, 128], strides = [1, 1]} : vector<8x512xf32> to vector<8x128xf32>
    %cst_93 = arith.constant 5.000000e-01 : f32
    %214 = vector.broadcast %cst_93 : f32 to vector<8x128xf32>
    %215 = arith.mulf %214, %213 : vector<8x128xf32>
    %216 = math.tanh %215 : vector<8x128xf32>
    %cst_94 = arith.constant 5.000000e-01 : f32
    %217 = vector.broadcast %cst_94 : f32 to vector<8x128xf32>
    %218 = arith.mulf %217, %216 : vector<8x128xf32>
    %cst_95 = arith.constant 5.000000e-01 : f32
    %219 = vector.broadcast %cst_95 : f32 to vector<8x128xf32>
    %220 = arith.addf %218, %219 : vector<8x128xf32>
    %221 = arith.mulf %210, %178 : vector<8x128xf32>
    %222 = arith.mulf %202, %212 : vector<8x128xf32>
    %223 = arith.addf %221, %222 : vector<8x128xf32>
    %224 = math.tanh %223 : vector<8x128xf32>
    %225 = arith.mulf %220, %224 : vector<8x128xf32>
    %c32 = arith.constant 32 : index
    %c0_96 = arith.constant 0 : index
    %226 = vector.load %arg8[%c32, %c0_96] : memref<64x128xf32, #tpu.memory_space<vmem>>, vector<8x128xf32>
    tpu.vector_store %arg8[%c32, %c0_96], %225 {strides = array<i32>} : memref<64x128xf32, #tpu.memory_space<vmem>>, vector<8x128xf32>,
    %c5 = arith.constant 5 : index
    %c0_97 = arith.constant 0 : index
    %c0_98 = arith.constant 0 : index
    %227 = vector.load %arg1[%c5, %c0_97, %c0_98] : memref<8x8x1xf32, #tpu.memory_space<vmem>>, vector<1x8x1xf32>
    %228 = vector.shape_cast %227 : vector<1x8x1xf32> to vector<8x1xf32>
    %c0_99 = arith.constant 0 : index
    %c0_100 = arith.constant 0 : index
    %229 = vector.load %arg2[%c0_99, %c0_100] : memref<1x512xf32, #tpu.memory_space<vmem>>, vector<1x512xf32>
    %230 = vector.broadcast %228 : vector<8x1xf32> to vector<8x512xf32>
    %231 = vector.broadcast %229 : vector<1x512xf32> to vector<8x512xf32>
    %232 = arith.mulf %230, %231 : vector<8x512xf32>
    %c0_101 = arith.constant 0 : index
    %c0_102 = arith.constant 0 : index
    %233 = vector.load %arg3[%c0_101, %c0_102] : memref<1x512xf32, #tpu.memory_space<vmem>>, vector<1x512xf32>
    %234 = vector.broadcast %233 : vector<1x512xf32> to vector<8x512xf32>
    %235 = arith.addf %232, %234 : vector<8x512xf32>
    %236 = vector.extract_strided_slice %225 {offsets = [0, 0], sizes = [8, 32], strides = [1, 1]} : vector<8x128xf32> to vector<8x32xf32>
    %c0_103 = arith.constant 0 : index
    %c0_104 = arith.constant 0 : index
    %237 = vector.load %arg4[%c0_103, %c0_104] : memref<32x512xf32, #tpu.memory_space<vmem>>, vector<32x512xf32>
    %cst_105 = arith.constant dense<0.000000e+00> : vector<8x512xf32>
    %238 = tpu.matmul %236, %237, %cst_105 {dimension_numbers = #tpu.dot_dimension_numbers<[1], [0], [0], [1], [0, 0, 1, 1], [], []>} : vector<8x32xf32>, vector<32x512xf32>, vector<8x512xf32> -> vector<8x512xf32>
    %239 = arith.addf %235, %238 : vector<8x512xf32>
    %240 = vector.extract_strided_slice %239 {offsets = [0, 0], sizes = [8, 128], strides = [1, 1]} : vector<8x512xf32> to vector<8x128xf32>
    %cst_106 = arith.constant 5.000000e-01 : f32
    %241 = vector.broadcast %cst_106 : f32 to vector<8x128xf32>
    %242 = arith.mulf %241, %240 : vector<8x128xf32>
    %243 = math.tanh %242 : vector<8x128xf32>
    %cst_107 = arith.constant 5.000000e-01 : f32
    %244 = vector.broadcast %cst_107 : f32 to vector<8x128xf32>
    %245 = arith.mulf %244, %243 : vector<8x128xf32>
    %cst_108 = arith.constant 5.000000e-01 : f32
    %246 = vector.broadcast %cst_108 : f32 to vector<8x128xf32>
    %247 = arith.addf %245, %246 : vector<8x128xf32>
    %248 = vector.extract_strided_slice %239 {offsets = [0, 128], sizes = [8, 128], strides = [1, 1]} : vector<8x512xf32> to vector<8x128xf32>
    %cst_109 = arith.constant 5.000000e-01 : f32
    %249 = vector.broadcast %cst_109 : f32 to vector<8x128xf32>
    %250 = arith.mulf %249, %248 : vector<8x128xf32>
    %251 = math.tanh %250 : vector<8x128xf32>
    %cst_110 = arith.constant 5.000000e-01 : f32
    %252 = vector.broadcast %cst_110 : f32 to vector<8x128xf32>
    %253 = arith.mulf %252, %251 : vector<8x128xf32>
    %cst_111 = arith.constant 5.000000e-01 : f32
    %254 = vector.broadcast %cst_111 : f32 to vector<8x128xf32>
    %255 = arith.addf %253, %254 : vector<8x128xf32>
    %256 = vector.extract_strided_slice %239 {offsets = [0, 256], sizes = [8, 128], strides = [1, 1]} : vector<8x512xf32> to vector<8x128xf32>
    %257 = math.tanh %256 : vector<8x128xf32>
    %258 = vector.extract_strided_slice %239 {offsets = [0, 384], sizes = [8, 128], strides = [1, 1]} : vector<8x512xf32> to vector<8x128xf32>
    %cst_112 = arith.constant 5.000000e-01 : f32
    %259 = vector.broadcast %cst_112 : f32 to vector<8x128xf32>
    %260 = arith.mulf %259, %258 : vector<8x128xf32>
    %261 = math.tanh %260 : vector<8x128xf32>
    %cst_113 = arith.constant 5.000000e-01 : f32
    %262 = vector.broadcast %cst_113 : f32 to vector<8x128xf32>
    %263 = arith.mulf %262, %261 : vector<8x128xf32>
    %cst_114 = arith.constant 5.000000e-01 : f32
    %264 = vector.broadcast %cst_114 : f32 to vector<8x128xf32>
    %265 = arith.addf %263, %264 : vector<8x128xf32>
    %266 = arith.mulf %255, %223 : vector<8x128xf32>
    %267 = arith.mulf %247, %257 : vector<8x128xf32>
    %268 = arith.addf %266, %267 : vector<8x128xf32>
    %269 = math.tanh %268 : vector<8x128xf32>
    %270 = arith.mulf %265, %269 : vector<8x128xf32>
    %c40 = arith.constant 40 : index
    %c0_115 = arith.constant 0 : index
    %271 = vector.load %arg8[%c40, %c0_115] : memref<64x128xf32, #tpu.memory_space<vmem>>, vector<8x128xf32>
    tpu.vector_store %arg8[%c40, %c0_115], %270 {strides = array<i32>} : memref<64x128xf32, #tpu.memory_space<vmem>>, vector<8x128xf32>,
    %c6 = arith.constant 6 : index
    %c0_116 = arith.constant 0 : index
    %c0_117 = arith.constant 0 : index
    %272 = vector.load %arg1[%c6, %c0_116, %c0_117] : memref<8x8x1xf32, #tpu.memory_space<vmem>>, vector<1x8x1xf32>
    %273 = vector.shape_cast %272 : vector<1x8x1xf32> to vector<8x1xf32>
    %c0_118 = arith.constant 0 : index
    %c0_119 = arith.constant 0 : index
    %274 = vector.load %arg2[%c0_118, %c0_119] : memref<1x512xf32, #tpu.memory_space<vmem>>, vector<1x512xf32>
    %275 = vector.broadcast %273 : vector<8x1xf32> to vector<8x512xf32>
    %276 = vector.broadcast %274 : vector<1x512xf32> to vector<8x512xf32>
    %277 = arith.mulf %275, %276 : vector<8x512xf32>
    %c0_120 = arith.constant 0 : index
    %c0_121 = arith.constant 0 : index
    %278 = vector.load %arg3[%c0_120, %c0_121] : memref<1x512xf32, #tpu.memory_space<vmem>>, vector<1x512xf32>
    %279 = vector.broadcast %278 : vector<1x512xf32> to vector<8x512xf32>
    %280 = arith.addf %277, %279 : vector<8x512xf32>
    %281 = vector.extract_strided_slice %270 {offsets = [0, 0], sizes = [8, 32], strides = [1, 1]} : vector<8x128xf32> to vector<8x32xf32>
    %c0_122 = arith.constant 0 : index
    %c0_123 = arith.constant 0 : index
    %282 = vector.load %arg4[%c0_122, %c0_123] : memref<32x512xf32, #tpu.memory_space<vmem>>, vector<32x512xf32>
    %cst_124 = arith.constant dense<0.000000e+00> : vector<8x512xf32>
    %283 = tpu.matmul %281, %282, %cst_124 {dimension_numbers = #tpu.dot_dimension_numbers<[1], [0], [0], [1], [0, 0, 1, 1], [], []>} : vector<8x32xf32>, vector<32x512xf32>, vector<8x512xf32> -> vector<8x512xf32>
    %284 = arith.addf %280, %283 : vector<8x512xf32>
    %285 = vector.extract_strided_slice %284 {offsets = [0, 0], sizes = [8, 128], strides = [1, 1]} : vector<8x512xf32> to vector<8x128xf32>
    %cst_125 = arith.constant 5.000000e-01 : f32
    %286 = vector.broadcast %cst_125 : f32 to vector<8x128xf32>
    %287 = arith.mulf %286, %285 : vector<8x128xf32>
    %288 = math.tanh %287 : vector<8x128xf32>
    %cst_126 = arith.constant 5.000000e-01 : f32
    %289 = vector.broadcast %cst_126 : f32 to vector<8x128xf32>
    %290 = arith.mulf %289, %288 : vector<8x128xf32>
    %cst_127 = arith.constant 5.000000e-01 : f32
    %291 = vector.broadcast %cst_127 : f32 to vector<8x128xf32>
    %292 = arith.addf %290, %291 : vector<8x128xf32>
    %293 = vector.extract_strided_slice %284 {offsets = [0, 128], sizes = [8, 128], strides = [1, 1]} : vector<8x512xf32> to vector<8x128xf32>
    %cst_128 = arith.constant 5.000000e-01 : f32
    %294 = vector.broadcast %cst_128 : f32 to vector<8x128xf32>
    %295 = arith.mulf %294, %293 : vector<8x128xf32>
    %296 = math.tanh %295 : vector<8x128xf32>
    %cst_129 = arith.constant 5.000000e-01 : f32
    %297 = vector.broadcast %cst_129 : f32 to vector<8x128xf32>
    %298 = arith.mulf %297, %296 : vector<8x128xf32>
    %cst_130 = arith.constant 5.000000e-01 : f32
    %299 = vector.broadcast %cst_130 : f32 to vector<8x128xf32>
    %300 = arith.addf %298, %299 : vector<8x128xf32>
    %301 = vector.extract_strided_slice %284 {offsets = [0, 256], sizes = [8, 128], strides = [1, 1]} : vector<8x512xf32> to vector<8x128xf32>
    %302 = math.tanh %301 : vector<8x128xf32>
    %303 = vector.extract_strided_slice %284 {offsets = [0, 384], sizes = [8, 128], strides = [1, 1]} : vector<8x512xf32> to vector<8x128xf32>
    %cst_131 = arith.constant 5.000000e-01 : f32
    %304 = vector.broadcast %cst_131 : f32 to vector<8x128xf32>
    %305 = arith.mulf %304, %303 : vector<8x128xf32>
    %306 = math.tanh %305 : vector<8x128xf32>
    %cst_132 = arith.constant 5.000000e-01 : f32
    %307 = vector.broadcast %cst_132 : f32 to vector<8x128xf32>
    %308 = arith.mulf %307, %306 : vector<8x128xf32>
    %cst_133 = arith.constant 5.000000e-01 : f32
    %309 = vector.broadcast %cst_133 : f32 to vector<8x128xf32>
    %310 = arith.addf %308, %309 : vector<8x128xf32>
    %311 = arith.mulf %300, %268 : vector<8x128xf32>
    %312 = arith.mulf %292, %302 : vector<8x128xf32>
    %313 = arith.addf %311, %312 : vector<8x128xf32>
    %314 = math.tanh %313 : vector<8x128xf32>
    %315 = arith.mulf %310, %314 : vector<8x128xf32>
    %c48 = arith.constant 48 : index
    %c0_134 = arith.constant 0 : index
    %316 = vector.load %arg8[%c48, %c0_134] : memref<64x128xf32, #tpu.memory_space<vmem>>, vector<8x128xf32>
    tpu.vector_store %arg8[%c48, %c0_134], %315 {strides = array<i32>} : memref<64x128xf32, #tpu.memory_space<vmem>>, vector<8x128xf32>,
    %c7 = arith.constant 7 : index
    %c0_135 = arith.constant 0 : index
    %c0_136 = arith.constant 0 : index
    %317 = vector.load %arg1[%c7, %c0_135, %c0_136] : memref<8x8x1xf32, #tpu.memory_space<vmem>>, vector<1x8x1xf32>
    %318 = vector.shape_cast %317 : vector<1x8x1xf32> to vector<8x1xf32>
    %c0_137 = arith.constant 0 : index
    %c0_138 = arith.constant 0 : index
    %319 = vector.load %arg2[%c0_137, %c0_138] : memref<1x512xf32, #tpu.memory_space<vmem>>, vector<1x512xf32>
    %320 = vector.broadcast %318 : vector<8x1xf32> to vector<8x512xf32>
    %321 = vector.broadcast %319 : vector<1x512xf32> to vector<8x512xf32>
    %322 = arith.mulf %320, %321 : vector<8x512xf32>
    %c0_139 = arith.constant 0 : index
    %c0_140 = arith.constant 0 : index
    %323 = vector.load %arg3[%c0_139, %c0_140] : memref<1x512xf32, #tpu.memory_space<vmem>>, vector<1x512xf32>
    %324 = vector.broadcast %323 : vector<1x512xf32> to vector<8x512xf32>
    %325 = arith.addf %322, %324 : vector<8x512xf32>
    %326 = vector.extract_strided_slice %315 {offsets = [0, 0], sizes = [8, 32], strides = [1, 1]} : vector<8x128xf32> to vector<8x32xf32>
    %c0_141 = arith.constant 0 : index
    %c0_142 = arith.constant 0 : index
    %327 = vector.load %arg4[%c0_141, %c0_142] : memref<32x512xf32, #tpu.memory_space<vmem>>, vector<32x512xf32>
    %cst_143 = arith.constant dense<0.000000e+00> : vector<8x512xf32>
    %328 = tpu.matmul %326, %327, %cst_143 {dimension_numbers = #tpu.dot_dimension_numbers<[1], [0], [0], [1], [0, 0, 1, 1], [], []>} : vector<8x32xf32>, vector<32x512xf32>, vector<8x512xf32> -> vector<8x512xf32>
    %329 = arith.addf %325, %328 : vector<8x512xf32>
    %330 = vector.extract_strided_slice %329 {offsets = [0, 0], sizes = [8, 128], strides = [1, 1]} : vector<8x512xf32> to vector<8x128xf32>
    %cst_144 = arith.constant 5.000000e-01 : f32
    %331 = vector.broadcast %cst_144 : f32 to vector<8x128xf32>
    %332 = arith.mulf %331, %330 : vector<8x128xf32>
    %333 = math.tanh %332 : vector<8x128xf32>
    %cst_145 = arith.constant 5.000000e-01 : f32
    %334 = vector.broadcast %cst_145 : f32 to vector<8x128xf32>
    %335 = arith.mulf %334, %333 : vector<8x128xf32>
    %cst_146 = arith.constant 5.000000e-01 : f32
    %336 = vector.broadcast %cst_146 : f32 to vector<8x128xf32>
    %337 = arith.addf %335, %336 : vector<8x128xf32>
    %338 = vector.extract_strided_slice %329 {offsets = [0, 128], sizes = [8, 128], strides = [1, 1]} : vector<8x512xf32> to vector<8x128xf32>
    %cst_147 = arith.constant 5.000000e-01 : f32
    %339 = vector.broadcast %cst_147 : f32 to vector<8x128xf32>
    %340 = arith.mulf %339, %338 : vector<8x128xf32>
    %341 = math.tanh %340 : vector<8x128xf32>
    %cst_148 = arith.constant 5.000000e-01 : f32
    %342 = vector.broadcast %cst_148 : f32 to vector<8x128xf32>
    %343 = arith.mulf %342, %341 : vector<8x128xf32>
    %cst_149 = arith.constant 5.000000e-01 : f32
    %344 = vector.broadcast %cst_149 : f32 to vector<8x128xf32>
    %345 = arith.addf %343, %344 : vector<8x128xf32>
    %346 = vector.extract_strided_slice %329 {offsets = [0, 256], sizes = [8, 128], strides = [1, 1]} : vector<8x512xf32> to vector<8x128xf32>
    %347 = math.tanh %346 : vector<8x128xf32>
    %348 = vector.extract_strided_slice %329 {offsets = [0, 384], sizes = [8, 128], strides = [1, 1]} : vector<8x512xf32> to vector<8x128xf32>
    %cst_150 = arith.constant 5.000000e-01 : f32
    %349 = vector.broadcast %cst_150 : f32 to vector<8x128xf32>
    %350 = arith.mulf %349, %348 : vector<8x128xf32>
    %351 = math.tanh %350 : vector<8x128xf32>
    %cst_151 = arith.constant 5.000000e-01 : f32
    %352 = vector.broadcast %cst_151 : f32 to vector<8x128xf32>
    %353 = arith.mulf %352, %351 : vector<8x128xf32>
    %cst_152 = arith.constant 5.000000e-01 : f32
    %354 = vector.broadcast %cst_152 : f32 to vector<8x128xf32>
    %355 = arith.addf %353, %354 : vector<8x128xf32>
    %356 = arith.mulf %345, %313 : vector<8x128xf32>
    %357 = arith.mulf %337, %347 : vector<8x128xf32>
    %358 = arith.addf %356, %357 : vector<8x128xf32>
    %359 = math.tanh %358 : vector<8x128xf32>
    %360 = arith.mulf %355, %359 : vector<8x128xf32>
    %c56 = arith.constant 56 : index
    %c0_153 = arith.constant 0 : index
    %361 = vector.load %arg8[%c56, %c0_153] : memref<64x128xf32, #tpu.memory_space<vmem>>, vector<8x128xf32>
    tpu.vector_store %arg8[%c56, %c0_153], %360 {strides = array<i32>} : memref<64x128xf32, #tpu.memory_space<vmem>>, vector<8x128xf32>,
    %c0_154 = arith.constant 0 : index
    %c0_155 = arith.constant 0 : index
    %362 = vector.load %arg8[%c0_154, %c0_155] : memref<64x128xf32, #tpu.memory_space<vmem>>, vector<64x128xf32>
    %c0_156 = arith.constant 0 : index
    %c0_157 = arith.constant 0 : index
    %363 = vector.load %arg5[%c0_156, %c0_157] : memref<128x128xf32, #tpu.memory_space<vmem>>, vector<128x128xf32>
    %cst_158 = arith.constant dense<0.000000e+00> : vector<64x128xf32>
    %364 = tpu.matmul %362, %363, %cst_158 {dimension_numbers = #tpu.dot_dimension_numbers<[1], [0], [0], [1], [0, 0, 1, 1], [], []>} : vector<64x128xf32>, vector<128x128xf32>, vector<64x128xf32> -> vector<64x128xf32>
    %c0_159 = arith.constant 0 : index
    %c0_160 = arith.constant 0 : index
    %365 = vector.load %arg6[%c0_159, %c0_160] : memref<1x128xf32, #tpu.memory_space<vmem>>, vector<1x128xf32>
    %366 = vector.broadcast %365 : vector<1x128xf32> to vector<64x128xf32>
    %367 = arith.addf %364, %366 : vector<64x128xf32>
    %c0_161 = arith.constant 0 : index
    %c0_162 = arith.constant 0 : index
    %368 = vector.load %arg7[%c0_161, %c0_162] : memref<64x128xf32, #tpu.memory_space<vmem>>, vector<64x128xf32>
    tpu.vector_store %arg7[%c0_161, %c0_162], %367 {strides = array<i32>} : memref<64x128xf32, #tpu.memory_space<vmem>>, vector<64x128xf32>,
    return
  }
  func.func @transform_0(%arg0: i32) -> (i32, i32, i32) {
    %c0_i32 = arith.constant 0 : i32
    %c0_i32_0 = arith.constant 0 : i32
    %c0_i32_1 = arith.constant 0 : i32
    %c0_i32_2 = arith.constant 0 : i32
    return %c0_i32, %c0_i32_0, %c0_i32_1 : i32, i32, i32
  }
  func.func @transform_1(%arg0: i32) -> (i32, i32) {
    %c0_i32 = arith.constant 0 : i32
    %c0_i32_0 = arith.constant 0 : i32
    %c0_i32_1 = arith.constant 0 : i32
    return %c0_i32, %c0_i32_0 : i32, i32
  }
  func.func @transform_2(%arg0: i32) -> (i32, i32) {
    %c0_i32 = arith.constant 0 : i32
    %c0_i32_0 = arith.constant 0 : i32
    %c0_i32_1 = arith.constant 0 : i32
    return %c0_i32, %c0_i32_0 : i32, i32
  }
  func.func @transform_3(%arg0: i32) -> (i32, i32) {
    %c0_i32 = arith.constant 0 : i32
    %c0_i32_0 = arith.constant 0 : i32
    %c0_i32_1 = arith.constant 0 : i32
    return %c0_i32, %c0_i32_0 : i32, i32
  }
  func.func @transform_4(%arg0: i32) -> (i32, i32) {
    %c0_i32 = arith.constant 0 : i32
    %c0_i32_0 = arith.constant 0 : i32
    %c0_i32_1 = arith.constant 0 : i32
    return %c0_i32, %c0_i32_0 : i32, i32
  }
  func.func @transform_5(%arg0: i32) -> (i32, i32) {
    %c0_i32 = arith.constant 0 : i32
    %c0_i32_0 = arith.constant 0 : i32
    %c0_i32_1 = arith.constant 0 : i32
    return %c0_i32, %c0_i32_0 : i32, i32
  }
  func.func @transform_6(%arg0: i32) -> (i32, i32) {
    %c0_i32 = arith.constant 0 : i32
    %c0_i32_0 = arith.constant 0 : i32
    %c0_i32_1 = arith.constant 0 : i32
    return %c0_i32, %c0_i32_0 : i32, i32
  }
}

</mosaic_0001>

<bundles_post_ra>
// kernel: lstm_forward.1
= control target key start
LH: loop header
LB: loop body
LE: loop exit
PB: predicated region body
PF: predicated region fallthrough
CT: control target
= control target key end

     0   :  { %v2289_v3 = vmov 0.0   ;;  %v2290_v4 = vmov 0   ;;  %v31_v22 = vlaneseq  ;;  %vm97_vm0 = vcmask 261120   ;;  %s2915_s3 = inlined_call_operand.vmem [shape: f32[32,512], index: 3, kind: input, shape index: {}]   ;;  %s2916_s0 = inlined_call_operand.vmem [shape: f32[8,8,1], index: 0, kind: input, shape index: {}]   ;;  %s2917_s1 = inlined_call_operand.vmem [shape: f32[1,512], index: 1, kind: input, shape index: {}]   ;;  %s2918_s2 = inlined_call_operand.vmem [shape: f32[1,512], index: 2, kind: input, shape index: {}]   ;;  %s2919_s4 = inlined_call_operand.vmem [shape: f32[128,128], index: 4, kind: input, shape index: {}]   ;;  %s2920_s5 = inlined_call_operand.vmem [shape: f32[1,128], index: 5, kind: input, shape index: {}]   ;;  %s2921_s6 = inlined_call_operand.vmem [shape: f32[64,128], index: 6, kind: output, shape index: {}]  }
   0x1   :  { %v2329_v0 = vld [vmem:[%s2915_s3 + $0x68] sm:$0xff]  ;;  %v2334_v1 = vld [vmem:[%s2915_s3 + $0x60] sm:$0xff]  ;;  %165 = vmatprep.mubr.f32.mxu1 %v2289_v3  ;;  %2207 = vset.pattern.permute.xlu0 %v2290_v4  ;;  %v2383_v11 = vld [vmem:[%s2915_s3 + $0x78] sm:$0xff] }
   0x2   :  { %v2339_v2 = vld [vmem:[%s2915_s3 + $0x48] sm:$0xff]  ;;  %125 = vmatprep.subr.mxu1 %v2329_v0  ;;  %v2346_v5 = vld [vmem:[%s2915_s3 + $0x40] sm:$0xff]  ;;  %2208 = vset.pattern.permute.xlu1 %v2290_v4  ;;  %v2389_v12 = vld [vmem:[%s2915_s3 + $0x70] sm:$0xff]  ;;  %v32_v23 = vshrl.u32 %v31_v22, 7 }
   0x3   :  { %126 = vmatpush1.msra.mxu1 %v2334_v1  ;;  %v2352_v6 = vld [vmem:[%s2915_s3 + $0x28] sm:$0xff]  ;;  %854 = vmatprep.subr.mxu0 %v2329_v0  ;;  %v2359_v7 = vld [vmem:[%s2915_s3 + $0x20] sm:$0xff]  ;;  %v2396_v13 = vld [vmem:[%s2915_s3 + $0x58] sm:$0xff] }
   0x4   :  { %127 = vmatprep.subr.mxu1 %v2339_v2  ;;  %855 = vmatpush1.msra.mxu0 %v2334_v1  ;;  %v2366_v8 = vld [vmem:[%s2915_s3 + $0x8] sm:$0xff]  ;;  %v2373_v9 = vld [vmem:[%s2915_s3] sm:$0xff]  ;;  %v2407_v15 = vld [vmem:[%s2915_s3 + $0x50] sm:$0xff]  ;;  %v2458_v24 = vsub.s32 0, %v32_v23  ;;  %v2463_v26 = vsub.s32 1, %v32_v23  ;;  %v2471_v33 = vsub.s32 2, %v32_v23 }
   0x5   :  { %128 = vmatpush1.msra.mxu1 %v2346_v5  ;;  %856 = vmatprep.subr.mxu0 %v2339_v2  ;;  %v23_v10 = vld [vmem:[%s2916_s0] sm:$0xff]  ;;  %v2115_v14 = vld [vmem:[%s2916_s0 + $0x8] sm:$0xff]  ;;  %v2413_v16 = vld [vmem:[%s2915_s3 + $0x38] sm:$0xff]  ;;  %v2474_v37 = vsub.s32 3, %v32_v23 }
   0x6   :  { %129 = vmatprep.subr.mxu1 %v2352_v6  ;;  %857 = vmatpush1.msra.mxu0 %v2346_v5  ;;  %v2420_v17 = vld [vmem:[%s2915_s3 + $0x30] sm:$0xff]  ;;  %v2426_v18 = vld [vmem:[%s2915_s3 + $0x18] sm:$0xff]  ;;  %v2124_v19 = vld [vmem:[%s2916_s0 + $0x20] sm:$0xff] }
   0x7   :  { %130 = vmatpush1.msra.mxu1 %v2359_v7  ;;  %27 = vperm.xlu0 %2207, %v23_v10   ;;  %v2436_v20 = vld [vmem:[%s2915_s3 + $0x10] sm:$0xff]  ;;  %v24_v25 = vld [vmem:[%s2917_s1] sm:$0xf] }
   0x8   :  { %131 = vmatprep.subr.mxu1 %v2366_v8  ;;  %858 = vmatprep.subr.mxu0 %v2352_v6  ;;  %v2130_v21 = vld [vmem:[%s2916_s0 + $0x30] sm:$0xff]  ;;  %v34_v27 = vrot.slane %v24_v25, %v2458_v24  ;;  %v55_v28 = vld [vmem:[%s2918_s2] sm:$0xf]  ;;  %v38_v29 = vrot.slane %v24_v25, %v2463_v26  ;;  %v42_v39 = vrot.slane %v24_v25, %v2471_v33 }
   0x9   :  { %132 = vmatpush1.msra.mxu1 %v2373_v9  ;;  %859 = vmatpush1.msra.mxu0 %v2359_v7  ;;  %v60_v32 = vrot.slane %v55_v28, %v2458_v24  ;;  %v64_v35 = vrot.slane %v55_v28, %v2463_v26  ;;  %v46_v43 = vrot.slane %v24_v25, %v2474_v37 }
   0xa   :  { %166 = vmatmul.mubr.f32.vlgmr.msra.gmra.mxu1 %v2289_v3  ;;  %196 = vmatprep.subr.mxu1 %v2383_v11  ;;  %v68_v47 = vrot.slane %v55_v28, %v2471_v33  ;;  %v72_v51 = vrot.slane %v55_v28, %v2474_v37  ;;  %v2118_v28 = vld [vmem:[%s2916_s0 + $0x10] sm:$0xff] }
   0xb   :  { %197 = vmatpush1.msra.mxu1 %v2389_v12  ;;  %236 = vmatprep.mubr.f32.mxu1 %v2289_v3 }
   0xc   :  { %198 = vmatprep.subr.mxu1 %v2396_v13  ;;  %271 = vperm.xlu0 %2207, %v2115_v14  }
   0xd   :  { %199 = vmatpush1.msra.mxu1 %v2407_v15  ;;  %860 = vmatprep.subr.mxu0 %v2366_v8 }
   0xe   :  { %200 = vmatprep.subr.mxu1 %v2413_v16  ;;  %861 = vmatpush1.msra.mxu0 %v2373_v9 }
   0xf   :  { %201 = vmatpush1.msra.mxu1 %v2420_v17  ;;  %894 = vmatprep.mubr.f32.mxu0 %v2289_v3 }
  0x10   :  { %202 = vmatprep.subr.mxu1 %v2426_v18  ;;  %1000 = vperm.xlu0 %2207, %v2124_v19  }
  0x11   :  { %203 = vmatpush1.msra.mxu1 %v2436_v20  ;;  %1097 = vmatprep.subr.mxu0 %v2329_v0 }
  0x12   :  { %237 = vmatmul.mubr.f32.vlgmr.msra.gmra.mxu1 %v2289_v3  ;;  %368 = vmatprep.subr.mxu1 %v2329_v0 }
  0x13   :  { %369 = vmatpush1.msra.mxu1 %v2334_v1  ;;  %408 = vmatprep.mubr.f32.mxu1 %v2289_v3 }
  0x14   :  { %1486 = vperm.xlu0 %2207, %v2130_v21   ;;  %370 = vmatprep.subr.mxu1 %v2339_v2 }
  0x15   :  { %371 = vmatpush1.msra.mxu1 %v2346_v5  ;;  %514 = vperm.xlu1 %2208, %v2118_v28  }
  0x16   :  { %372 = vmatprep.subr.mxu1 %v2352_v6 }
  0x17   :  { %373 = vmatpush1.msra.mxu1 %v2359_v7 }
  0x18   :  { %374 = vmatprep.subr.mxu1 %v2366_v8 }
  0x19   :  { %375 = vmatpush1.msra.mxu1 %v2373_v9 }
  0x1a   :  { %439 = vmatprep.subr.mxu1 %v2383_v11 }
  0x82   :  { %v28_v30 = vpop.permute.xlu0 %27 }
  0x83   :  { %v51_v31 = vmul.f32 %v34_v27, %v28_v30  ;;  %v52_v34 = vmul.f32 %v38_v29, %v28_v30  ;;  %v53_v46 = vmul.f32 %v42_v39, %v28_v30  ;;  %v54_v50 = vmul.f32 %v46_v43, %v28_v30  ;;  %v2121_v29 = vld [vmem:[%s2916_s0 + $0x18] sm:$0xff]  ;;  %v2127_v30 = vld [vmem:[%s2916_s0 + $0x28] sm:$0xff] }
  0x84   :  { %757 = vperm.xlu1 %2208, %v2121_v29  }
  0x85   :  { %v77_v36 = vadd.f32 %v60_v32, %v51_v31  ;;  %v78_v38 = vadd.f32 %v64_v35, %v52_v34  ;;  %v79_v49 = vadd.f32 %v68_v47, %v53_v46  ;;  %v80_v55 = vadd.f32 %v72_v51, %v54_v50  ;;  %v2133_v31 = vld [vmem:[%s2916_s0 + $0x38] sm:$0xff]  ;;  %v268_v32 = vld [vmem:[%s2917_s1] sm:$0xf] }
  0x86   :  { %v278_v34 = vrot.slane %v268_v32, %v2458_v24  ;;  %v299_v35 = vld [vmem:[%s2918_s2] sm:$0xf] }
  0x88   :  { %1243 = vperm.xlu1 %2208, %v2127_v30  }
  0x8c   :  { %1729 = vperm.xlu1 %2208, %v2133_v31  }
  0xca   :  { %v167_v40 = vpop.f32.mrf.mxu1 }
  0xcb   :  { %v243_v41 = vadd.f32 %v167_v40, %v77_v36  ;;  %v282_v36 = vrot.slane %v268_v32, %v2463_v26  ;;  %v304_v40 = vrot.slane %v299_v35, %v2458_v24 }
  0xcc   :  { %v169_v42 = vpop.f32.mrf.mxu1 }
  0xcd   :  { %v247_v44 = vmul.f32 0.5, %v243_v41  ;;  %v244_v45 = vadd.f32 %v169_v42, %v78_v38  ;;  %v272_v38 = vpop.permute.xlu0 %271  ;;  %v308_v42 = vrot.slane %v299_v35, %v2463_v26 }
  0xce   :  { %v295_v39 = vmul.f32 %v278_v34, %v272_v38  ;;  %v296_v41 = vmul.f32 %v282_v36, %v272_v38 }
  0xcf   :  { %2209 = vtanh.f32 %v247_v44  ;;  %v251_v48 = vmul.f32 0.5, %v244_v45  ;;  %v286_v44 = vrot.slane %v268_v32, %v2471_v33 }
  0xd0   :  { %v321_v43 = vadd.f32 %v304_v40, %v295_v39  ;;  %v322_v47 = vadd.f32 %v308_v42, %v296_v41  ;;  %v542_v39 = vld [vmem:[%s2918_s2] sm:$0xf]  ;;  %v515_v41 = vpop.permute.xlu1 %514 }
  0xd1   :  { %2211 = vtanh.f32 %v251_v48 }
  0xd2   :  { %v238_v52 = vpop.f32.mrf.mxu1 }
  0xd3   :  { %v245_v53 = vadd.f32 %v238_v52, %v79_v49  ;;  %v290_v49 = vrot.slane %v268_v32, %v2474_v37  ;;  %v297_v52 = vmul.f32 %v286_v44, %v272_v38 }
  0xd4   :  { %v240_v54 = vpop.f32.mrf.mxu1 }
  0xd5   :  { %2213 = vtanh.f32 %v245_v53  ;;  %v246_v56 = vadd.f32 %v240_v54, %v80_v55  ;;  %v312_v53 = vrot.slane %v299_v35, %v2471_v33 }
  0xd7   :  { %v256_v57 = vmul.f32 0.5, %v246_v56  ;;  %v323_v55 = vadd.f32 %v312_v53, %v297_v52  ;;  %v298_v56 = vmul.f32 %v290_v49, %v272_v38 }
  0xd9   :  { %2215 = vtanh.f32 %v256_v57  ;;  %v316_v57 = vrot.slane %v299_v35, %v2474_v37 }
  0xdc   :  { %v2210_v58 = vpop.eup %2209 }
  0xdd   :  { %v249_v59 = vmul.f32 0.5, %v2210_v58 }
  0xde   :  { %v2212_v60 = vpop.eup %2211 }
  0xdf   :  { %v253_v61 = vmul.f32 0.5, %v2212_v60  ;;  %v250_v62 = vadd.f32 0.5, %v249_v59 }
  0xe1   :  { %v254_v63 = vadd.f32 0.5, %v253_v61  ;;  %v324_v61 = vadd.f32 %v316_v57, %v298_v56  ;;  %v555_v56 = vrot.slane %v542_v39, %v2471_v33 }
  0xe2   :  { %v2214_v4 = vpop.eup %2213 }
  0xe3   :  { %v260_v10 = vmul.f32 0.0, %v254_v63  ;;  %v261_v14 = vmul.f32 %v2214_v4, %v250_v62 }
  0xe5   :  { %v2480_v19 = vadd.f32 %v261_v14, %v260_v10 }
  0xe6   :  { %v2216_v21 = vpop.eup %2215 }
  0xe7   :  { %2217 = vtanh.f32 %v2480_v19  ;;  %v258_v22 = vmul.f32 0.5, %v2216_v21 }
  0xe9   :  { %v259_v23 = vadd.f32 0.5, %v258_v22 }
  0xf4   :  { %v2218_v25 = vpop.eup %2217 }
  0xf5   :  { %v2483_v27 = vmul.f32 %v2218_v25, %v259_v23 }
  0xf7   :  { %2116 = vmatmul.mubr.msk.f32.vlgmr.msra.gmra.mxu1 %vm97_vm0, %v2483_v27 }
  0xf8   :  { %440 = vmatpush1.msra.mxu1 %v2389_v12  ;;  %479 = vmatprep.mubr.f32.mxu1 %v2289_v3 }
  0xf9   :  { %441 = vmatprep.subr.mxu1 %v2396_v13 }
  0xfa   :  { %442 = vmatpush1.msra.mxu1 %v2407_v15 }
  0xfb   :  { %443 = vmatprep.subr.mxu1 %v2413_v16 }
  0xfc   :  { %444 = vmatpush1.msra.mxu1 %v2420_v17 }
  0xfd   :  { %445 = vmatprep.subr.mxu1 %v2426_v18 }
  0xfe   :  { %446 = vmatpush1.msra.mxu1 %v2436_v20 }
  0xff   :  { %2117 = vmatmul.mubr.msk.f32.vlgmr.msra.gmra.mxu1 %vm97_vm0, %v2483_v27  ;;  %611 = vmatprep.subr.mxu1 %v2329_v0 }
 0x100   :  { %612 = vmatpush1.msra.mxu1 %v2334_v1  ;;  %651 = vmatprep.mubr.f32.mxu1 %v2289_v3 }
 0x101   :  { %613 = vmatprep.subr.mxu1 %v2339_v2 }
 0x102   :  { %614 = vmatpush1.msra.mxu1 %v2346_v5 }
 0x103   :  { %615 = vmatprep.subr.mxu1 %v2352_v6 }
 0x104   :  { %616 = vmatpush1.msra.mxu1 %v2359_v7 }
 0x105   :  { %617 = vmatprep.subr.mxu1 %v2366_v8 }
 0x106   :  { %618 = vmatpush1.msra.mxu1 %v2373_v9 }
 0x107   :  { %682 = vmatprep.subr.mxu1 %v2383_v11 }
 0x1b7   :  { %v410_v45 = vpop.f32.mrf.mxu1 }
 0x1b8   :  { %v486_v46 = vadd.f32 %v410_v45, %v321_v43  ;;  %v547_v43 = vrot.slane %v542_v39, %v2458_v24  ;;  %v551_v45 = vrot.slane %v542_v39, %v2463_v26 }
 0x1b9   :  { %v412_v48 = vpop.f32.mrf.mxu1 }
 0x1ba   :  { %v490_v50 = vmul.f32 0.5, %v486_v46  ;;  %v487_v51 = vadd.f32 %v412_v48, %v322_v47 }
 0x1bc   :  { %2219 = vtanh.f32 %v490_v50  ;;  %v494_v54 = vmul.f32 0.5, %v487_v51 }
 0x1be   :  { %2221 = vtanh.f32 %v494_v54 }
 0x1bf   :  { %v481_v58 = vpop.f32.mrf.mxu1 }
 0x1c0   :  { %v488_v59 = vadd.f32 %v481_v58, %v323_v55 }
 0x1c1   :  { %v483_v60 = vpop.f32.mrf.mxu1 }
 0x1c2   :  { %2223 = vtanh.f32 %v488_v59  ;;  %v489_v62 = vadd.f32 %v483_v60, %v324_v61  ;;  %v559_v60 = vrot.slane %v542_v39, %v2474_v37 }
 0x1c4   :  { %v499_v63 = vmul.f32 0.5, %v489_v62 }
 0x1c6   :  { %2225 = vtanh.f32 %v499_v63 }
 0x1c9   :  { %v2220_v4 = vpop.eup %2219 }
 0x1ca   :  { %v492_v10 = vmul.f32 0.5, %v2220_v4 }
 0x1cb   :  { %v2222_v14 = vpop.eup %2221 }
 0x1cc   :  { %v493_v21 = vadd.f32 0.5, %v492_v10  ;;  %v496_v22 = vmul.f32 0.5, %v2222_v14 }
 0x1ce   :  { %v497_v23 = vadd.f32 0.5, %v496_v22 }
 0x1cf   :  { %v2224_v25 = vpop.eup %2223 }
 0x1d0   :  { %v503_v28 = vmul.f32 %v497_v23, %v2480_v19  ;;  %v504_v29 = vmul.f32 %v2224_v25, %v493_v21  ;;  %v511_v19 = vld [vmem:[%s2917_s1] sm:$0xf] }
 0x1d1   :  { %v521_v38 = vrot.slane %v511_v19, %v2458_v24  ;;  %v525_v40 = vrot.slane %v511_v19, %v2463_v26  ;;  %v529_v48 = vrot.slane %v511_v19, %v2471_v33  ;;  %v533_v52 = vrot.slane %v511_v19, %v2474_v37 }
 0x1d2   :  { %v2534_v30 = vadd.f32 %v504_v29, %v503_v28 }
 0x1d3   :  { %v2226_v31 = vpop.eup %2225  ;;  %v538_v42 = vmul.f32 %v521_v38, %v515_v41  ;;  %v539_v44 = vmul.f32 %v525_v40, %v515_v41  ;;  %v540_v55 = vmul.f32 %v529_v48, %v515_v41  ;;  %v541_v59 = vmul.f32 %v533_v52, %v515_v41 }
 0x1d4   :  { %2227 = vtanh.f32 %v2534_v30  ;;  %v501_v32 = vmul.f32 0.5, %v2226_v31 }
 0x1d5   :  { %v564_v46 = vadd.f32 %v547_v43, %v538_v42  ;;  %v565_v47 = vadd.f32 %v551_v45, %v539_v44  ;;  %v566_v58 = vadd.f32 %v555_v56, %v540_v55  ;;  %v567_v4 = vadd.f32 %v559_v60, %v541_v59  ;;  %v785_v43 = vld [vmem:[%s2918_s2] sm:$0xf]  ;;  %v758_v45 = vpop.permute.xlu1 %757 }
 0x1d6   :  { %v502_v34 = vadd.f32 0.5, %v501_v32 }
 0x1e1   :  { %v2228_v35 = vpop.eup %2227 }
 0x1e2   :  { %v2537_v36 = vmul.f32 %v2228_v35, %v502_v34 }
 0x1e4   :  { %2119 = vmatmul.mubr.msk.f32.vlgmr.msra.gmra.mxu1 %vm97_vm0, %v2537_v36 }
 0x1e5   :  { %683 = vmatpush1.msra.mxu1 %v2389_v12  ;;  %722 = vmatprep.mubr.f32.mxu1 %v2289_v3 }
 0x1e6   :  { %684 = vmatprep.subr.mxu1 %v2396_v13 }
 0x1e7   :  { %685 = vmatpush1.msra.mxu1 %v2407_v15 }
 0x1e8   :  { %686 = vmatprep.subr.mxu1 %v2413_v16 }
 0x1e9   :  { %687 = vmatpush1.msra.mxu1 %v2420_v17 }
 0x1ea   :  { %688 = vmatprep.subr.mxu1 %v2426_v18 }
 0x1eb   :  { %689 = vmatpush1.msra.mxu1 %v2436_v20 }
 0x1ec   :  { %2120 = vmatmul.mubr.msk.f32.vlgmr.msra.gmra.mxu1 %vm97_vm0, %v2537_v36  ;;  %925 = vmatprep.subr.mxu1 %v2383_v11 }
 0x1ed   :  { %926 = vmatpush1.msra.mxu1 %v2389_v12  ;;  %965 = vmatprep.mubr.f32.mxu1 %v2289_v3 }
 0x1ee   :  { %927 = vmatprep.subr.mxu1 %v2396_v13 }
 0x1ef   :  { %928 = vmatpush1.msra.mxu1 %v2407_v15 }
 0x1f0   :  { %929 = vmatprep.subr.mxu1 %v2413_v16 }
 0x1f1   :  { %930 = vmatpush1.msra.mxu1 %v2420_v17 }
 0x1f2   :  { %931 = vmatprep.subr.mxu1 %v2426_v18 }
 0x1f3   :  { %932 = vmatpush1.msra.mxu1 %v2436_v20 }
 0x1f4   :  { %1168 = vmatprep.subr.mxu1 %v2383_v11 }
 0x2a4   :  { %v653_v49 = vpop.f32.mrf.mxu1 }
 0x2a5   :  { %v729_v50 = vadd.f32 %v653_v49, %v564_v46 }
 0x2a6   :  { %v655_v51 = vpop.f32.mrf.mxu1 }
 0x2a7   :  { %v733_v53 = vmul.f32 0.5, %v729_v50  ;;  %v730_v54 = vadd.f32 %v655_v51, %v565_v47  ;;  %v790_v47 = vrot.slane %v785_v43, %v2458_v24 }
 0x2a9   :  { %2229 = vtanh.f32 %v733_v53  ;;  %v737_v57 = vmul.f32 0.5, %v730_v54  ;;  %v798_v53 = vrot.slane %v785_v43, %v2471_v33 }
 0x2ab   :  { %2231 = vtanh.f32 %v737_v57 }
 0x2ac   :  { %v724_v61 = vpop.f32.mrf.mxu1 }
 0x2ad   :  { %v731_v62 = vadd.f32 %v724_v61, %v566_v58 }
 0x2ae   :  { %v726_v63 = vpop.f32.mrf.mxu1 }
 0x2af   :  { %2233 = vtanh.f32 %v731_v62  ;;  %v732_v10 = vadd.f32 %v726_v63, %v567_v4  ;;  %v802_v4 = vrot.slane %v785_v43, %v2474_v37 }
 0x2b1   :  { %v742_v14 = vmul.f32 0.5, %v732_v10 }
 0x2b3   :  { %2235 = vtanh.f32 %v742_v14 }
 0x2b6   :  { %v2230_v21 = vpop.eup %2229 }
 0x2b7   :  { %v735_v22 = vmul.f32 0.5, %v2230_v21 }
 0x2b8   :  { %v2232_v23 = vpop.eup %2231 }
 0x2b9   :  { %v736_v25 = vadd.f32 0.5, %v735_v22  ;;  %v739_v28 = vmul.f32 0.5, %v2232_v23 }
 0x2bb   :  { %v740_v29 = vadd.f32 0.5, %v739_v28 }
 0x2bc   :  { %v2234_v31 = vpop.eup %2233 }
 0x2bd   :  { %v746_v32 = vmul.f32 %v740_v29, %v2534_v30  ;;  %v747_v34 = vmul.f32 %v2234_v31, %v736_v25  ;;  %v754_v30 = vld [vmem:[%s2917_s1] sm:$0xf] }
 0x2be   :  { %v764_v42 = vrot.slane %v754_v30, %v2458_v24  ;;  %v768_v44 = vrot.slane %v754_v30, %v2463_v26  ;;  %v776_v58 = vrot.slane %v754_v30, %v2474_v37 }
 0x2bf   :  { %v2576_v35 = vadd.f32 %v747_v34, %v746_v32 }
 0x2c0   :  { %v2236_v19 = vpop.eup %2235  ;;  %v781_v46 = vmul.f32 %v764_v42, %v758_v45  ;;  %v782_v48 = vmul.f32 %v768_v44, %v758_v45  ;;  %v784_v63 = vmul.f32 %v776_v58, %v758_v45 }
 0x2c1   :  { %2237 = vtanh.f32 %v2576_v35  ;;  %v744_v38 = vmul.f32 0.5, %v2236_v19 }
 0x2c2   :  { %v807_v49 = vadd.f32 %v790_v47, %v781_v46  ;;  %v810_v14 = vadd.f32 %v802_v4, %v784_v63 }
 0x2c3   :  { %v745_v39 = vadd.f32 0.5, %v744_v38 }
 0x2ce   :  { %v2238_v40 = vpop.eup %2237 }
 0x2cf   :  { %v2579_v41 = vmul.f32 %v2238_v40, %v745_v39 }
 0x2d1   :  { %2122 = vmatmul.mubr.msk.f32.vlgmr.msra.gmra.mxu0 %vm97_vm0, %v2579_v41  ;;  %2123 = vmatmul.mubr.msk.f32.vlgmr.msra.gmra.mxu1 %vm97_vm0, %v2579_v41 }
 0x2d2   :  { %1098 = vmatpush1.msra.mxu0 %v2334_v1  ;;  %1169 = vmatpush1.msra.mxu1 %v2389_v12 }
 0x2d3   :  { %1099 = vmatprep.subr.mxu0 %v2339_v2  ;;  %1170 = vmatprep.subr.mxu1 %v2396_v13 }
 0x2d4   :  { %1100 = vmatpush1.msra.mxu0 %v2346_v5  ;;  %1171 = vmatpush1.msra.mxu1 %v2407_v15 }
 0x2d5   :  { %1101 = vmatprep.subr.mxu0 %v2352_v6  ;;  %1172 = vmatprep.subr.mxu1 %v2413_v16 }
 0x2d6   :  { %1102 = vmatpush1.msra.mxu0 %v2359_v7  ;;  %1173 = vmatpush1.msra.mxu1 %v2420_v17 }
 0x2d7   :  { %1103 = vmatprep.subr.mxu0 %v2366_v8  ;;  %1174 = vmatprep.subr.mxu1 %v2426_v18 }
 0x2d8   :  { %1104 = vmatpush1.msra.mxu0 %v2373_v9  ;;  %1137 = vmatprep.mubr.f32.mxu0 %v2289_v3 }
 0x2d9   :  { %1175 = vmatpush1.msra.mxu1 %v2436_v20  ;;  %1208 = vmatprep.mubr.f32.mxu1 %v2289_v3 }
 0x2da   :  { %1340 = vmatprep.subr.mxu0 %v2329_v0  ;;  %1411 = vmatprep.subr.mxu1 %v2383_v11  ;;  %v772_v0 = vrot.slane %v754_v30, %v2471_v33  ;;  %v794_v11 = vrot.slane %v785_v43, %v2463_v26 }
 0x2dc   :  { %v783_v52 = vmul.f32 %v772_v0, %v758_v45  ;;  %v808_v54 = vadd.f32 %v794_v11, %v782_v48 }
 0x2de   :  { %v809_v60 = vadd.f32 %v798_v53, %v783_v52 }
 0x391   :  { %v896_v50 = vpop.f32.mrf.mxu0  ;;  %v967_v59 = vpop.f32.mrf.mxu1 }
 0x392   :  { %v972_v51 = vadd.f32 %v896_v50, %v807_v49  ;;  %v974_v62 = vadd.f32 %v967_v59, %v809_v60 }
 0x393   :  { %v898_v55 = vpop.f32.mrf.mxu0  ;;  %v969_v10 = vpop.f32.mrf.mxu1 }
 0x394   :  { %v976_v56 = vmul.f32 0.5, %v972_v51  ;;  %v973_v57 = vadd.f32 %v898_v55, %v808_v54  ;;  %v975_v21 = vadd.f32 %v969_v10, %v810_v14 }
 0x396   :  { %2239 = vtanh.f32 %v976_v56  ;;  %v980_v61 = vmul.f32 0.5, %v973_v57  ;;  %v985_v22 = vmul.f32 0.5, %v975_v21 }
 0x398   :  { %2241 = vtanh.f32 %v980_v61 }
 0x399   :  { %2243 = vtanh.f32 %v974_v62 }
 0x39a   :  { %2245 = vtanh.f32 %v985_v22 }
 0x3a3   :  { %v2240_v23 = vpop.eup %2239 }
 0x3a4   :  { %v978_v25 = vmul.f32 0.5, %v2240_v23 }
 0x3a5   :  { %v2242_v28 = vpop.eup %2241 }
 0x3a6   :  { %v979_v29 = vadd.f32 0.5, %v978_v25  ;;  %v982_v31 = vmul.f32 0.5, %v2242_v28  ;;  %v2244_v34 = vpop.eup %2243 }
 0x3a7   :  { %v2246_v40 = vpop.eup %2245 }
 0x3a8   :  { %v983_v32 = vadd.f32 0.5, %v982_v31  ;;  %v990_v38 = vmul.f32 %v2244_v34, %v979_v29  ;;  %v987_v30 = vmul.f32 0.5, %v2246_v40  ;;  %v1553_v31 = vld [vmem:[%s2915_s3 + $0x68] sm:$0xff]  ;;  %v2678_v34 = vld [vmem:[%s2915_s3 + $0x60] sm:$0xff] }
 0x3a9   :  { %v2702_v40 = vld [vmem:[%s2915_s3 + $0x40] sm:$0xff] }
 0x3aa   :  { %v989_v19 = vmul.f32 %v983_v32, %v2576_v35  ;;  %v988_v42 = vadd.f32 0.5, %v987_v30  ;;  %v1555_v32 = vld [vmem:[%s2915_s3 + $0x78] sm:$0xff]  ;;  %v2707_v30 = vld [vmem:[%s2915_s3 + $0x50] sm:$0xff] }
 0x3ac   :  { %v2618_v39 = vadd.f32 %v990_v38, %v989_v19  ;;  %v2683_v19 = vld [vmem:[%s2915_s3 + $0x70] sm:$0xff]  ;;  %v2690_v38 = vld [vmem:[%s2915_s3 + $0x48] sm:$0xff] }
 0x3ae   :  { %2247 = vtanh.f32 %v2618_v39 }
 0x3bb   :  { %v2248_v43 = vpop.eup %2247 }
 0x3bc   :  { %v2621_v44 = vmul.f32 %v2248_v43, %v988_v42  ;;  %v2714_v42 = vld [vmem:[%s2915_s3 + $0x28] sm:$0xff]  ;;  %v2719_v43 = vld [vmem:[%s2915_s3 + $0x38] sm:$0xff] }
 0x3be   :  { %2125 = vmatmul.mubr.msk.f32.vlgmr.msra.gmra.mxu0 %vm97_vm0, %v2621_v44  ;;  %2126 = vmatmul.mubr.msk.f32.vlgmr.msra.gmra.mxu1 %vm97_vm0, %v2621_v44 }
 0x3bf   :  { %1341 = vmatpush1.msra.mxu0 %v2334_v1  ;;  %1412 = vmatpush1.msra.mxu1 %v2389_v12  ;;  %v997_v1 = vld [vmem:[%s2917_s1] sm:$0xf] }
 0x3c0   :  { %1342 = vmatprep.subr.mxu0 %v2339_v2  ;;  %1413 = vmatprep.subr.mxu1 %v2396_v13  ;;  %v1007_v2 = vrot.slane %v997_v1, %v2458_v24  ;;  %v1015_v12 = vrot.slane %v997_v1, %v2471_v33  ;;  %v1019_v48 = vrot.slane %v997_v1, %v2474_v37 }
 0x3c1   :  { %1343 = vmatpush1.msra.mxu0 %v2346_v5  ;;  %1414 = vmatpush1.msra.mxu1 %v2407_v15  ;;  %v1028_v5 = vld [vmem:[%s2918_s2] sm:$0xf] }
 0x3c2   :  { %1344 = vmatprep.subr.mxu0 %v2352_v6  ;;  %1415 = vmatprep.subr.mxu1 %v2413_v16  ;;  %v1011_v6 = vrot.slane %v997_v1, %v2463_v26  ;;  %v1037_v15 = vrot.slane %v1028_v5, %v2463_v26  ;;  %v1041_v35 = vrot.slane %v1028_v5, %v2471_v33  ;;  %v2726_v1 = vld [vmem:[%s2915_s3 + $0x20] sm:$0xff] }
 0x3c3   :  { %1345 = vmatpush1.msra.mxu0 %v2359_v7  ;;  %1416 = vmatpush1.msra.mxu1 %v2420_v17  ;;  %v1001_v7 = vpop.permute.xlu0 %1000  ;;  %v1045_v53 = vrot.slane %v1028_v5, %v2474_v37 }
 0x3c4   :  { %1346 = vmatprep.subr.mxu0 %v2366_v8  ;;  %1417 = vmatprep.subr.mxu1 %v2426_v18  ;;  %v1024_v8 = vmul.f32 %v1007_v2, %v1001_v7  ;;  %v1025_v13 = vmul.f32 %v1011_v6, %v1001_v7  ;;  %v1027_v52 = vmul.f32 %v1019_v48, %v1001_v7  ;;  %v2731_v2 = vld [vmem:[%s2915_s3 + $0x30] sm:$0xff]  ;;  %v2743_v6 = vld [vmem:[%s2915_s3 + $0x18] sm:$0xff] }
 0x3c5   :  { %1347 = vmatpush1.msra.mxu0 %v2373_v9  ;;  %1380 = vmatprep.mubr.f32.mxu0 %v2289_v3  ;;  %v1033_v9 = vrot.slane %v1028_v5, %v2458_v24  ;;  %v2738_v5 = vld [vmem:[%s2915_s3 + $0x8] sm:$0xff] }
 0x3c6   :  { %1418 = vmatpush1.msra.mxu1 %v2436_v20  ;;  %1451 = vmatprep.mubr.f32.mxu1 %v2289_v3  ;;  %v1026_v20 = vmul.f32 %v1015_v12, %v1001_v7  ;;  %v1051_v45 = vadd.f32 %v1037_v15, %v1025_v13  ;;  %v1053_v55 = vadd.f32 %v1045_v53, %v1027_v52  ;;  %v2748_v7 = vld [vmem:[%s2915_s3] sm:$0xff] }
 0x3c7   :  { %v1050_v16 = vadd.f32 %v1033_v9, %v1024_v8  ;;  %1583 = vmatprep.subr.mxu0 %v1553_v31  ;;  %1654 = vmatprep.subr.mxu1 %v1555_v32  ;;  %v2755_v8 = vld [vmem:[%s2915_s3 + $0x10] sm:$0xff]  ;;  %v1240_v9 = vld [vmem:[%s2917_s1] sm:$0xf] }
 0x3c8   :  { %v1052_v49 = vadd.f32 %v1041_v35, %v1026_v20  ;;  %v1250_v12 = vrot.slane %v1240_v9, %v2458_v24  ;;  %v1271_v13 = vld [vmem:[%s2918_s2] sm:$0xf]  ;;  %v1254_v15 = vrot.slane %v1240_v9, %v2463_v26  ;;  %v1258_v20 = vrot.slane %v1240_v9, %v2471_v33 }
 0x3c9   :  { %v1262_v53 = vrot.slane %v1240_v9, %v2474_v37 }
 0x47e   :  { %v1139_v17 = vpop.f32.mrf.mxu0  ;;  %v1210_v11 = vpop.f32.mrf.mxu1 }
 0x47f   :  { %v1215_v18 = vadd.f32 %v1139_v17, %v1050_v16  ;;  %v1217_v51 = vadd.f32 %v1210_v11, %v1052_v49  ;;  %v1244_v16 = vpop.permute.xlu1 %1243  ;;  %v1284_v11 = vrot.slane %v1271_v13, %v2471_v33 }
 0x480   :  { %v1141_v46 = vpop.f32.mrf.mxu0  ;;  %v1212_v54 = vpop.f32.mrf.mxu1  ;;  %v1267_v17 = vmul.f32 %v1250_v12, %v1244_v16  ;;  %v1268_v35 = vmul.f32 %v1254_v15, %v1244_v16  ;;  %v1269_v48 = vmul.f32 %v1258_v20, %v1244_v16 }
 0x481   :  { %v1219_v47 = vmul.f32 0.5, %v1215_v18  ;;  %v1216_v0 = vadd.f32 %v1141_v46, %v1051_v45  ;;  %v1218_v56 = vadd.f32 %v1212_v54, %v1053_v55  ;;  %v1276_v18 = vrot.slane %v1271_v13, %v2458_v24 }
 0x482   :  { %v1280_v45 = vrot.slane %v1271_v13, %v2463_v26  ;;  %v1295_v55 = vadd.f32 %v1284_v11, %v1269_v48 }
 0x483   :  { %2249 = vtanh.f32 %v1219_v47  ;;  %v1223_v50 = vmul.f32 0.5, %v1216_v0  ;;  %v1228_v57 = vmul.f32 0.5, %v1218_v56  ;;  %v1293_v46 = vadd.f32 %v1276_v18, %v1267_v17 }
 0x484   :  { %v1294_v49 = vadd.f32 %v1280_v45, %v1268_v35 }
 0x485   :  { %2251 = vtanh.f32 %v1223_v50 }
 0x486   :  { %2253 = vtanh.f32 %v1217_v51 }
 0x487   :  { %2255 = vtanh.f32 %v1228_v57 }
 0x490   :  { %v2250_v58 = vpop.eup %2249 }
 0x491   :  { %v1221_v59 = vmul.f32 0.5, %v2250_v58  ;;  %v1270_v58 = vmul.f32 %v1262_v53, %v1244_v16 }
 0x492   :  { %v2252_v60 = vpop.eup %2251 }
 0x493   :  { %v1222_v61 = vadd.f32 0.5, %v1221_v59  ;;  %v1225_v62 = vmul.f32 0.5, %v2252_v60  ;;  %v2254_v4 = vpop.eup %2253  ;;  %v1288_v59 = vrot.slane %v1271_v13, %v2474_v37 }
 0x494   :  { %v2256_v22 = vpop.eup %2255 }
 0x495   :  { %v1226_v63 = vadd.f32 0.5, %v1225_v62  ;;  %v1233_v14 = vmul.f32 %v2254_v4, %v1222_v61  ;;  %v1230_v23 = vmul.f32 0.5, %v2256_v22  ;;  %v1296_v61 = vadd.f32 %v1288_v59, %v1270_v58 }
 0x497   :  { %v1232_v10 = vmul.f32 %v1226_v63, %v2618_v39  ;;  %v1231_v25 = vadd.f32 0.5, %v1230_v23  ;;  %v2695_v39 = vld [vmem:[%s2915_s3 + $0x58] sm:$0xff] }
 0x499   :  { %v2658_v21 = vadd.f32 %v1233_v14, %v1232_v10 }
 0x49b   :  { %2257 = vtanh.f32 %v2658_v21 }
 0x4a8   :  { %v2258_v28 = vpop.eup %2257 }
 0x4a9   :  { %v2661_v29 = vmul.f32 %v2258_v28, %v1231_v25 }
 0x4ab   :  { %2128 = vmatmul.mubr.msk.f32.vlgmr.msra.gmra.mxu0 %vm97_vm0, %v2661_v29  ;;  %2129 = vmatmul.mubr.msk.f32.vlgmr.msra.gmra.mxu1 %vm97_vm0, %v2661_v29 }
 0x4ac   :  { %1623 = vmatprep.mubr.f32.mxu0 %v2289_v3  ;;  %1694 = vmatprep.mubr.f32.mxu1 %v2289_v3 }
 0x4ad   :  { %1584 = vmatpush1.msra.mxu0 %v2678_v34  ;;  %1655 = vmatpush1.msra.mxu1 %v2683_v19 }
 0x4ae   :  { %1585 = vmatprep.subr.mxu0 %v2690_v38  ;;  %1656 = vmatprep.subr.mxu1 %v2695_v39 }
 0x4af   :  { %1586 = vmatpush1.msra.mxu0 %v2702_v40  ;;  %1657 = vmatpush1.msra.mxu1 %v2707_v30 }
 0x4b0   :  { %1587 = vmatprep.subr.mxu0 %v2714_v42  ;;  %1658 = vmatprep.subr.mxu1 %v2719_v43 }
 0x4b1   :  { %1588 = vmatpush1.msra.mxu0 %v2726_v1  ;;  %1659 = vmatpush1.msra.mxu1 %v2731_v2 }
 0x4b2   :  { %1589 = vmatprep.subr.mxu0 %v2738_v5  ;;  %1660 = vmatprep.subr.mxu1 %v2743_v6 }
 0x4b3   :  { %1590 = vmatpush1.msra.mxu0 %v2748_v7  ;;  %1661 = vmatpush1.msra.mxu1 %v2755_v8 }
 0x4b4   :  { %1826 = vmatprep.subr.mxu0 %v1553_v31  ;;  %1897 = vmatprep.subr.mxu1 %v1555_v32 }
 0x56b   :  { %v1382_v47 = vpop.f32.mrf.mxu0  ;;  %v1453_v54 = vpop.f32.mrf.mxu1 }
 0x56c   :  { %v1458_v0 = vadd.f32 %v1382_v47, %v1293_v46  ;;  %v1460_v57 = vadd.f32 %v1453_v54, %v1295_v55 }
 0x56d   :  { %v1384_v50 = vpop.f32.mrf.mxu0  ;;  %v1455_v60 = vpop.f32.mrf.mxu1 }
 0x56e   :  { %v1462_v51 = vmul.f32 0.5, %v1458_v0  ;;  %v1459_v52 = vadd.f32 %v1384_v50, %v1294_v49  ;;  %v1461_v62 = vadd.f32 %v1455_v60, %v1296_v61 }
 0x570   :  { %2259 = vtanh.f32 %v1462_v51  ;;  %v1466_v56 = vmul.f32 0.5, %v1459_v52  ;;  %v1471_v63 = vmul.f32 0.5, %v1461_v62 }
 0x572   :  { %2261 = vtanh.f32 %v1466_v56 }
 0x573   :  { %2263 = vtanh.f32 %v1460_v57 }
 0x574   :  { %2265 = vtanh.f32 %v1471_v63 }
 0x57d   :  { %v2260_v4 = vpop.eup %2259 }
 0x57e   :  { %v1464_v10 = vmul.f32 0.5, %v2260_v4 }
 0x57f   :  { %v2262_v14 = vpop.eup %2261 }
 0x580   :  { %v1465_v22 = vadd.f32 0.5, %v1464_v10  ;;  %v1468_v23 = vmul.f32 0.5, %v2262_v14  ;;  %v2264_v28 = vpop.eup %2263 }
 0x581   :  { %v2266_v12 = vpop.eup %2265 }
 0x582   :  { %v1469_v25 = vadd.f32 0.5, %v1468_v23  ;;  %v1476_v32 = vmul.f32 %v2264_v28, %v1465_v22  ;;  %v1473_v13 = vmul.f32 0.5, %v2266_v12  ;;  %v1989_v28 = vld [vmem:[%s2919_s4 + $0x70] sm:$0xff]  ;;  %v1984_v12 = vld [vmem:[%s2919_s4 + $0x48] sm:$0xff] }
 0x584   :  { %v1475_v31 = vmul.f32 %v1469_v25, %v2658_v21  ;;  %v1474_v15 = vadd.f32 0.5, %v1473_v13  ;;  %v1990_v21 = vld [vmem:[%s2919_s4 + $0x78] sm:$0xff]  ;;  %v1983_v13 = vld [vmem:[%s2919_s4 + $0x40] sm:$0xff] }
 0x586   :  { %v2774_v9 = vadd.f32 %v1476_v32, %v1475_v31  ;;  %v1988_v31 = vld [vmem:[%s2919_s4 + $0x68] sm:$0xff]  ;;  %v1987_v32 = vld [vmem:[%s2919_s4 + $0x60] sm:$0xff] }
 0x588   :  { %2267 = vtanh.f32 %v2774_v9 }
 0x595   :  { %v2268_v16 = vpop.eup %2267 }
 0x596   :  { %v2777_v17 = vmul.f32 %v2268_v16, %v1474_v15  ;;  %v1982_v15 = vld [vmem:[%s2919_s4 + $0x38] sm:$0xff]  ;;  %v1981_v16 = vld [vmem:[%s2919_s4 + $0x30] sm:$0xff] }
 0x598   :  { %2131 = vmatmul.mubr.msk.f32.vlgmr.msra.gmra.mxu0 %vm97_vm0, %v2777_v17  ;;  %2132 = vmatmul.mubr.msk.f32.vlgmr.msra.gmra.mxu1 %vm97_vm0, %v2777_v17 }
 0x599   :  { %1827 = vmatpush1.msra.mxu0 %v2678_v34  ;;  %1898 = vmatpush1.msra.mxu1 %v2683_v19  ;;  %v1483_v34 = vld [vmem:[%s2917_s1] sm:$0xf] }
 0x59a   :  { %1828 = vmatprep.subr.mxu0 %v2690_v38  ;;  %1899 = vmatprep.subr.mxu1 %v2695_v39  ;;  %v1493_v19 = vrot.slane %v1483_v34, %v2458_v24  ;;  %v1487_v38 = vpop.permute.xlu0 %1486  ;;  %v1514_v39 = vld [vmem:[%s2918_s2] sm:$0xf]  ;;  %v1505_v35 = vrot.slane %v1483_v34, %v2474_v37 }
 0x59b   :  { %1829 = vmatpush1.msra.mxu0 %v2702_v40  ;;  %1900 = vmatpush1.msra.mxu1 %v2707_v30  ;;  %v1497_v40 = vrot.slane %v1483_v34, %v2463_v26  ;;  %v1531_v50 = vrot.slane %v1514_v39, %v2474_v37 }
 0x59c   :  { %1830 = vmatprep.subr.mxu0 %v2714_v42  ;;  %1901 = vmatprep.subr.mxu1 %v2719_v43  ;;  %v1510_v30 = vmul.f32 %v1493_v19, %v1487_v38  ;;  %v1501_v42 = vrot.slane %v1483_v34, %v2471_v33  ;;  %v1513_v11 = vmul.f32 %v1505_v35, %v1487_v38  ;;  %v1979_v34 = vld [vmem:[%s2919_s4 + $0x20] sm:$0xff]  ;;  %v1978_v19 = vld [vmem:[%s2919_s4 + $0x18] sm:$0xff] }
 0x59d   :  { %1831 = vmatpush1.msra.mxu0 %v2726_v1  ;;  %1902 = vmatpush1.msra.mxu1 %v2731_v2  ;;  %v1511_v43 = vmul.f32 %v1497_v40, %v1487_v38  ;;  %v1523_v1 = vrot.slane %v1514_v39, %v2463_v26  ;;  %v1975_v40 = vld [vmem:[%s2919_s4] sm:$0xff] }
 0x59e   :  { %1832 = vmatprep.subr.mxu0 %v2738_v5  ;;  %1903 = vmatprep.subr.mxu1 %v2743_v6  ;;  %v1512_v6 = vmul.f32 %v1501_v42, %v1487_v38  ;;  %v1539_v52 = vadd.f32 %v1531_v50, %v1513_v11  ;;  %v1977_v38 = vld [vmem:[%s2919_s4 + $0x10] sm:$0xff]  ;;  %v1730_v42 = vpop.permute.xlu1 %1729 }
 0x59f   :  { %1833 = vmatpush1.msra.mxu0 %v2748_v7  ;;  %1866 = vmatprep.mubr.f32.mxu0 %v2289_v3  ;;  %v1537_v18 = vadd.f32 %v1523_v1, %v1511_v43 }
 0x5a0   :  { %1904 = vmatpush1.msra.mxu1 %v2755_v8  ;;  %1937 = vmatprep.mubr.f32.mxu1 %v2289_v3  ;;  %v1519_v3 = vrot.slane %v1514_v39, %v2458_v24  ;;  %v1527_v8 = vrot.slane %v1514_v39, %v2471_v33  ;;  %v1976_v39 = vld [vmem:[%s2919_s4 + $0x8] sm:$0xff] }
 0x5a1   :  { %2161 = vmatprep.subr.mxu0 %v1990_v21 }
 0x5a2   :  { %v1536_v2 = vadd.f32 %v1519_v3, %v1510_v30  ;;  %v1538_v0 = vadd.f32 %v1527_v8, %v1512_v6  ;;  %v1726_v30 = vld [vmem:[%s2917_s1] sm:$0xf] }
 0x5a3   :  { %v1736_v3 = vrot.slane %v1726_v30, %v2458_v24  ;;  %v1748_v35 = vrot.slane %v1726_v30, %v2474_v37 }
 0x5a5   :  { %v1753_v43 = vmul.f32 %v1736_v3, %v1730_v42 }
 0x658   :  { %v1625_v5 = vpop.f32.mrf.mxu0  ;;  %v1696_v47 = vpop.f32.mrf.mxu1 }
 0x659   :  { %v1701_v7 = vadd.f32 %v1625_v5, %v1536_v2  ;;  %v1703_v49 = vadd.f32 %v1696_v47, %v1538_v0 }
 0x65a   :  { %v1627_v20 = vpop.f32.mrf.mxu0  ;;  %v1698_v51 = vpop.f32.mrf.mxu1 }
 0x65b   :  { %v1705_v45 = vmul.f32 0.5, %v1701_v7  ;;  %v1702_v46 = vadd.f32 %v1627_v20, %v1537_v18  ;;  %v1704_v53 = vadd.f32 %v1698_v51, %v1539_v52 }
 0x65d   :  { %2269 = vtanh.f32 %v1705_v45  ;;  %v1709_v48 = vmul.f32 0.5, %v1702_v46  ;;  %v1714_v54 = vmul.f32 0.5, %v1704_v53 }
 0x65f   :  { %2271 = vtanh.f32 %v1709_v48  ;;  %v1756_v48 = vmul.f32 %v1748_v35, %v1730_v42 }
 0x660   :  { %2273 = vtanh.f32 %v1703_v49 }
 0x661   :  { %2275 = vtanh.f32 %v1714_v54 }
 0x66a   :  { %v2270_v55 = vpop.eup %2269 }
 0x66b   :  { %v1707_v56 = vmul.f32 0.5, %v2270_v55 }
 0x66c   :  { %v2272_v57 = vpop.eup %2271 }
 0x66d   :  { %v1708_v58 = vadd.f32 0.5, %v1707_v56  ;;  %v1711_v59 = vmul.f32 0.5, %v2272_v57  ;;  %v2274_v61 = vpop.eup %2273 }
 0x66e   :  { %v2276_v10 = vpop.eup %2275 }
 0x66f   :  { %v1712_v60 = vadd.f32 0.5, %v1711_v59  ;;  %v1719_v63 = vmul.f32 %v2274_v61, %v1708_v58  ;;  %v1716_v14 = vmul.f32 0.5, %v2276_v10 }
 0x671   :  { %v1718_v62 = vmul.f32 %v1712_v60, %v2774_v9  ;;  %v1717_v22 = vadd.f32 0.5, %v1716_v14  ;;  %v1986_v9 = vld [vmem:[%s2919_s4 + $0x58] sm:$0xff] }
 0x673   :  { %v2817_v4 = vadd.f32 %v1719_v63, %v1718_v62 }
 0x675   :  { %2277 = vtanh.f32 %v2817_v4 }
 0x682   :  { %v2278_v23 = vpop.eup %2277 }
 0x683   :  { %v1722_v25 = vmul.f32 %v2278_v23, %v1717_v22 }
 0x685   :  { %2134 = vmatmul.mubr.msk.f32.vlgmr.msra.gmra.mxu0 %vm97_vm0, %v1722_v25  ;;  %2135 = vmatmul.mubr.msk.f32.vlgmr.msra.gmra.mxu1 %vm97_vm0, %v1722_v25 }
 0x686   :  { %2162 = vmatpush3.msra.mxu0 %v1990_v21  ;;  %2193 = vmatprep.mubr.f32.mxu0 %v2483_v27  ;;  %v1985_v27 = vld [vmem:[%s2919_s4 + $0x50] sm:$0xff]  ;;  %v1980_v21 = vld [vmem:[%s2919_s4 + $0x28] sm:$0xff] }
 0x687   :  { %2163 = vmatprep.subr.mxu0 %v1989_v28 }
 0x688   :  { %2164 = vmatpush3.msra.mxu0 %v1989_v28 }
 0x689   :  { %2165 = vmatprep.subr.mxu0 %v1988_v31 }
 0x68a   :  { %2166 = vmatpush3.msra.mxu0 %v1988_v31 }
 0x68b   :  { %2167 = vmatprep.subr.mxu0 %v1987_v32 }
 0x68c   :  { %2168 = vmatpush3.msra.mxu0 %v1987_v32 }
 0x68d   :  { %2169 = vmatprep.subr.mxu0 %v1986_v9 }
 0x68e   :  { %2170 = vmatpush3.msra.mxu0 %v1986_v9 }
 0x68f   :  { %2171 = vmatprep.subr.mxu0 %v1985_v27 }
 0x690   :  { %2172 = vmatpush3.msra.mxu0 %v1985_v27 }
 0x691   :  { %2173 = vmatprep.subr.mxu0 %v1984_v12 }
 0x692   :  { %2174 = vmatpush3.msra.mxu0 %v1984_v12 }
 0x693   :  { %2175 = vmatprep.subr.mxu0 %v1983_v13 }
 0x694   :  { %2176 = vmatpush3.msra.mxu0 %v1983_v13 }
 0x695   :  { %2177 = vmatprep.subr.mxu0 %v1982_v15 }
 0x696   :  { %2178 = vmatpush3.msra.mxu0 %v1982_v15 }
 0x697   :  { %2179 = vmatprep.subr.mxu0 %v1981_v16 }
 0x698   :  { %2180 = vmatpush3.msra.mxu0 %v1981_v16 }
 0x699   :  { %2181 = vmatprep.subr.mxu0 %v1980_v21 }
 0x69a   :  { %2182 = vmatpush3.msra.mxu0 %v1980_v21 }
 0x69b   :  { %2183 = vmatprep.subr.mxu0 %v1979_v34 }
 0x69c   :  { %2184 = vmatpush3.msra.mxu0 %v1979_v34 }
 0x69d   :  { %2185 = vmatprep.subr.mxu0 %v1978_v19 }
 0x69e   :  { %2186 = vmatpush3.msra.mxu0 %v1978_v19 }
 0x69f   :  { %2187 = vmatprep.subr.mxu0 %v1977_v38 }
 0x6a0   :  { %2188 = vmatpush3.msra.mxu0 %v1977_v38 }
 0x6a1   :  { %2189 = vmatprep.subr.mxu0 %v1976_v39 }
 0x6a2   :  { %2190 = vmatpush3.msra.mxu0 %v1976_v39 }
 0x6a3   :  { %2191 = vmatprep.subr.mxu0 %v1975_v40 }
 0x6a4   :  { %2192 = vmatpush3.msra.mxu0 %v1975_v40 }
 0x6a5   :  { %2194 = vmatmul.mubr.f32.vlgmr.msra.gmra.mxu0 %v2537_v36  ;;  %v1757_v36 = vld [vmem:[%s2918_s2] sm:$0xf] }
 0x6a6   :  { %2196 = vmatprep.mubr.f32.mxu0 %v2579_v41  ;;  %v1740_v41 = vrot.slane %v1726_v30, %v2463_v26  ;;  %v1766_v1 = vrot.slane %v1757_v36, %v2463_v26  ;;  %v1770_v8 = vrot.slane %v1757_v36, %v2471_v33  ;;  %v1774_v26 = vrot.slane %v1757_v36, %v2474_v37  ;;  %v2136_v37 = vld [vmem:[%s2920_s5] ss:$0 sm:$0xff] }
 0x6a8   :  { %v1782_v50 = vadd.f32 %v1774_v26, %v1756_v48 }
 0x6a9   :  { %2197 = vmatmul.mubr.f32.gmra.mxu0 %v2621_v44  ;;  %v1762_v44 = vrot.slane %v1757_v36, %v2458_v24 }
 0x6aa   :  { %2199 = vmatprep.mubr.f32.mxu0 %v2661_v29  ;;  %v1744_v29 = vrot.slane %v1726_v30, %v2471_v33 }
 0x6ab   :  { %v1779_v2 = vadd.f32 %v1762_v44, %v1753_v43 }
 0x6ac   :  { %v1755_v6 = vmul.f32 %v1744_v29, %v1730_v42 }
 0x6ad   :  { %2200 = vmatmul.mubr.f32.gmra.mxu0 %v2777_v17  ;;  %v1754_v17 = vmul.f32 %v1740_v41, %v1730_v42 }
 0x6ae   :  { %2202 = vmatprep.mubr.f32.mxu0 %v1722_v25  ;;  %v1781_v24 = vadd.f32 %v1770_v8, %v1755_v6 }
 0x6af   :  { %v1780_v18 = vadd.f32 %v1766_v1, %v1754_v17 }
 0x745   :  { %v1868_v5 = vpop.f32.mrf.mxu0  ;;  %v1939_v47 = vpop.f32.mrf.mxu1 }
 0x746   :  { %v1944_v7 = vadd.f32 %v1868_v5, %v1779_v2  ;;  %v1946_v11 = vadd.f32 %v1939_v47, %v1781_v24 }
 0x747   :  { %v1870_v20 = vpop.f32.mrf.mxu0  ;;  %v1941_v49 = vpop.f32.mrf.mxu1 }
 0x748   :  { %v1948_v45 = vmul.f32 0.5, %v1944_v7  ;;  %v1945_v46 = vadd.f32 %v1870_v20, %v1780_v18  ;;  %v1947_v51 = vadd.f32 %v1941_v49, %v1782_v50 }
 0x74a   :  { %2279 = vtanh.f32 %v1948_v45  ;;  %v1952_v0 = vmul.f32 0.5, %v1945_v46  ;;  %v1957_v33 = vmul.f32 0.5, %v1947_v51 }
 0x74c   :  { %2281 = vtanh.f32 %v1952_v0 }
 0x74d   :  { %2283 = vtanh.f32 %v1946_v11 }
 0x74e   :  { %2285 = vtanh.f32 %v1957_v33 }
 0x757   :  { %v2280_v52 = vpop.eup %2279 }
 0x758   :  { %v1950_v53 = vmul.f32 0.5, %v2280_v52 }
 0x759   :  { %v2282_v54 = vpop.eup %2281 }
 0x75a   :  { %v1951_v55 = vadd.f32 0.5, %v1950_v53  ;;  %v1954_v56 = vmul.f32 0.5, %v2282_v54  ;;  %v2284_v58 = vpop.eup %2283 }
 0x75b   :  { %v2286_v10 = vpop.eup %2285 }
 0x75c   :  { %v1955_v57 = vadd.f32 0.5, %v1954_v56  ;;  %v1962_v60 = vmul.f32 %v2284_v58, %v1951_v55  ;;  %v1959_v25 = vmul.f32 0.5, %v2286_v10 }
 0x75e   :  { %v1961_v59 = vmul.f32 %v1955_v57, %v2817_v4  ;;  %v1960_v9 = vadd.f32 0.5, %v1959_v25 }
 0x760   :  { %v1963_v61 = vadd.f32 %v1962_v60, %v1961_v59 }
 0x762   :  { %2287 = vtanh.f32 %v1963_v61 }
 0x765   :  { %v2195_v62 = vpop.f32.mrf.mxu0 }
 0x766   :  { %v2070_v63 = vadd.f32 %v2195_v62, %v2136_v37 }
 0x767   :  { %v2064_v14 = vpop.f32.mrf.mxu0 }
 0x768   :  { %2104 = vst [vmem:[%s2921_s6 + $0x8] sm:$0xff] %v2070_v63  ;;  %v2065_v22 = vadd.f32 %v2136_v37, %v2064_v14 }
 0x769   :  { %v2198_v23 = vpop.f32.mrf.mxu0 }
 0x76a   :  { %2103 = vst [vmem:[%s2921_s6] sm:$0xff] %v2065_v22  ;;  %v2080_v4 = vadd.f32 %v2198_v23, %v2136_v37 }
 0x76b   :  { %v2074_v28 = vpop.f32.mrf.mxu0 }
 0x76c   :  { %2106 = vst [vmem:[%s2921_s6 + $0x18] sm:$0xff] %v2080_v4  ;;  %v2075_v31 = vadd.f32 %v2136_v37, %v2074_v28 }
 0x76d   :  { %v2201_v32 = vpop.f32.mrf.mxu0 }
 0x76e   :  { %2105 = vst [vmem:[%s2921_s6 + $0x10] sm:$0xff] %v2075_v31  ;;  %v2090_v27 = vadd.f32 %v2201_v32, %v2136_v37 }
 0x76f   :  { %v2288_v12 = vpop.eup %2287  ;;  %v2084_v13 = vpop.f32.mrf.mxu0 }
 0x770   :  { %2108 = vst [vmem:[%s2921_s6 + $0x28] sm:$0xff] %v2090_v27  ;;  %v2085_v15 = vadd.f32 %v2136_v37, %v2084_v13  ;;  %v1965_v16 = vmul.f32 %v2288_v12, %v1960_v9 }
 0x772   :  { %2107 = vst [vmem:[%s2921_s6 + $0x20] sm:$0xff] %v2085_v15  ;;  %2203 = vmatmul.mubr.f32.gmra.mxu0 %v1965_v16 }
 0x832   :  { %v2204_v21 = vpop.f32.mrf.mxu0 }
 0x833   :  { %v2100_v34 = vadd.f32 %v2204_v21, %v2136_v37 }
 0x834   :  { %v2094_v19 = vpop.f32.mrf.mxu0 }
 0x835   :  { %2110 = vst [vmem:[%s2921_s6 + $0x38] sm:$0xff] %v2100_v34  ;;  %v2095_v38 = vadd.f32 %v2136_v37, %v2094_v19 }
 0x837   :  { %2109 = vst [vmem:[%s2921_s6 + $0x30] sm:$0xff] %v2095_v38 }

</bundles_post_ra>
